<compile_context>
chip_gen: v7x
topology: tpu7x:2x2x1
jax: 0.10.0
libtpu: 0.0.40
codegen_flags: <defaults>
</compile_context>

<pallas_src>
import functools

import jax
import jax.numpy as jnp
from jax import lax
from jax.experimental import pallas as pl
from jax.experimental.pallas import tpu as pltpu


# Contract lhs dim 0 with rhs dim 0  (== lhs.T @ rhs): folds the
# NCHW -> channels-last transpose of the activations into the MXU op.
_CONTRACT_LHS0 = (((0,), (0,)), ((), ()))
# Contract lhs dim 1 with rhs dim 1  (== lhs @ rhs.T): emits the final conv
# result directly in NCHW ([Cout, HW]) layout.
_CONTRACT_RHS1 = (((1,), (1,)), ((), ()))


# ---------------------------------------------------------------------------
# Fused kernel: one grid step == one batch element.
#   pre_ref/post_ref : [Cin, HW]      NCHW block (channels on sublanes)
#   w1_ref           : [2Cin, 2Chid]  block-diagonal stage-1 weights
#   b1/sig/omg refs  : [1, 2Chid]
#   w2s/w2f refs     : [2Chid, Chid]  half-zeroed stage-2 weights
#   b2s/b2f refs     : [1, Chid]
#   wft_ref          : [Cout, Chid]   final weights, pre-transposed
#   bfc_ref          : [Cout, 1]
#   o_ref            : [Cout, HW]     NCHW output block
#   pack_ref         : [2Cin, HW]     VMEM scratch (branch packing)
# ---------------------------------------------------------------------------
def _tff_fused_kernel(pre_ref, post_ref,
                      w1_ref, b1_ref, sig_ref, omg_ref,
                      w2s_ref, b2s_ref, w2f_ref, b2f_ref,
                      wft_ref, bfc_ref,
                      o_ref, pack_ref, *, H, W):
    Cin = pre_ref.shape[0]
    HW = H * W

    # Pack both branches along the channel (sublane) axis -> [2*Cin, HW].
    pack_ref[0:Cin, :] = pre_ref[...]
    pack_ref[Cin:2 * Cin, :] = post_ref[...]

    # Stage 1: ONE block-diagonal 1x1 conv for both branches (single MXU dot).
    # Contracting the packed-channel dim folds the channels-last transpose
    # into the matmul, so no host-side layout glue is needed.
    h = lax.dot_general(pack_ref[...], w1_ref[...], _CONTRACT_LHS0,
                        preferred_element_type=jnp.float32) + b1_ref[...]

    # Shared Gabor activation, evaluated once on the packed hidden tensor.
    sig = sig_ref[...]
    omg = omg_ref[...]
    g = h * (jnp.exp(-sig * h * h) * jnp.cos(omg * h))

    # Stage 2: two lane-aligned dots; the half-zeroed weights pick the
    # pre / post halves of the packed hidden dim (no lane roll needed).
    pre2 = jnp.dot(g, w2s_ref[...],
                   preferred_element_type=jnp.float32) + b2s_ref[...]
    post2 = jnp.dot(g, w2f_ref[...],
                    preferred_element_type=jnp.float32) + b2f_ref[...]

    C = pre2.shape[-1]
    pre3 = pre2.reshape(H, W, C)     # [h, w, c]
    post3 = post2.reshape(H, W, C)   # [w, k, c]

    # Spatial combine: comb[h, k, c] = sum_w pre3[h, w, c] * post3[w, k, c]
    # VPU FMAs with channels dense on the lane axis; two accumulators break
    # the serial add dependency chain.
    # TODO(synk): for W >~ 16 move this contraction onto the MXU
    # (dot_general with w as contracting dim, channels blocked) instead of
    # O(HW*W*C) VPU FMAs.
    accs = [None, None]
    for w in range(W):
        term = pre3[:, w:w + 1, :] * post3[w:w + 1, :, :]
        s = w & 1
        accs[s] = term if accs[s] is None else accs[s] + term
    comb3 = accs[0] if accs[1] is None else accs[0] + accs[1]
    comb = comb3.reshape(HW, C)

    # Final 1x1 conv, emitted directly in NCHW layout ([Cout, HW]) so the
    # wrapper needs no slice / transpose epilogue.
    o_ref[...] = lax.dot_general(wft_ref[...], comb, _CONTRACT_RHS1,
                                 preferred_element_type=jnp.float32) + bfc_ref[...]


# ---------------------------------------------------------------------------
# TFF forward (host-side: free reshapes + tiny parameter packing only)
# ---------------------------------------------------------------------------
def tff_forward(pre_feature, post_feature, params):
    B, Cin, H, W = pre_feature.shape
    assert H == W, "torch.matmul on [B,C,H,W] x [B,C,H,W] requires H == W"
    Chid = params["pre_w1"].shape[1]
    Cout = params["final_w"].shape[1]
    HW = H * W

    # NCHW in, NCHW out: only free reshapes on the host.
    pre_r = pre_feature.reshape(B, Cin, HW)
    post_r = post_feature.reshape(B, Cin, HW)

    # Tiny one-time parameter packing: block-diagonal stage-1 weights,
    # half-zeroed stage-2 weights, duplicated shared Gabor params,
    # pre-transposed final weights.
    zc = jnp.zeros((Cin, Chid), jnp.float32)
    zh = jnp.zeros((Chid, Chid), jnp.float32)
    w1 = jnp.concatenate(
        [jnp.concatenate([params["pre_w1"], zc], axis=1),
         jnp.concatenate([zc, params["post_w1"]], axis=1)], axis=0)  # [2Cin, 2Chid]
    b1 = jnp.concatenate([params["pre_b1"], params["post_b1"]], axis=1)
    sig = jnp.concatenate([params["sigma"], params["sigma"]], axis=1)
    omg = jnp.concatenate([params["omega"], params["omega"]], axis=1)
    w2s = jnp.concatenate([params["spa_w2"], zh], axis=0)            # [2Chid, Chid]
    w2f = jnp.concatenate([zh, params["fre_w2"]], axis=0)            # [2Chid, Chid]
    b2s, b2f = params["spa_b2"], params["fre_b2"]                    # [1, Chid]
    wft = params["final_w"].T                                        # [Cout, Chid]
    bfc = params["final_b"].T                                        # [Cout, 1]

    act_spec = pl.BlockSpec((None, Cin, HW), lambda b: (b, 0, 0))
    out_spec = pl.BlockSpec((None, Cout, HW), lambda b: (b, 0, 0))

    def full(a):  # whole (small) parameter array, same block every grid step
        return pl.BlockSpec(a.shape, lambda b, n=a.ndim: (0,) * n)

    # TODO(synk): for large B, block several batch elements per grid step
    # (rows = Bblk*HW) to fill the MXU M dimension, keeping >= 2 grid steps so
    # "parallel" still shards across the two TensorCores on v7x.
    # TODO(synk): for large H*W, add a row-tiled grid axis over HW for the
    # 1x1-conv stages plus an h-blocked combine, and set vmem_limit_bytes, so
    # the per-step working set stays under v7x's 64 MiB VMEM.
    # TODO(synk): once MXU-bound (large C), cast dot operands to bf16 and
    # single-buffer the weight BlockSpecs (pipeline_mode=pl.Buffered(1)).
    out = pl.pallas_call(
        functools.partial(_tff_fused_kernel, H=H, W=W),
        grid=(B,),
        in_specs=[act_spec, act_spec,
                  full(w1), full(b1), full(sig), full(omg),
                  full(w2s), full(b2s), full(w2f), full(b2f),
                  full(wft), full(bfc)],
        out_specs=out_spec,
        out_shape=jax.ShapeDtypeStruct((B, Cout, HW), jnp.float32),
        scratch_shapes=[pltpu.VMEM((2 * Cin, HW), jnp.float32)],
        compiler_params=pltpu.CompilerParams(
            dimension_semantics=("parallel",)),
    )(pre_r, post_r, w1, b1, sig, omg, w2s, b2s, w2f, b2f, wft, bfc)

    return out.reshape(B, Cout, H, W)


# ---------------------------------------------------------------------------
# Deterministic parameter init (1x1-conv weights stored as [Cin, Cout]).
# sigma is non-negative so the correctness check is numerically stable
# (the forward formula is unchanged).
# ---------------------------------------------------------------------------
def init_params(key, in_channels, hidden_dim, out_channels):
    ks = jax.random.split(key, 12)

    def conv_w(k, cin, cout):
        return jax.random.normal(k, (cin, cout), jnp.float32) / jnp.sqrt(cin)

    def conv_b(k, cout):
        return jax.random.normal(k, (1, cout), jnp.float32) * 0.01

    return {
        "pre_w1":  conv_w(ks[0], in_channels, hidden_dim),
        "pre_b1":  conv_b(ks[1], hidden_dim),
        "post_w1": conv_w(ks[2], in_channels, hidden_dim),
        "post_b1": conv_b(ks[3], hidden_dim),
        # GaborActivation params: torch shape [C,1,1] -> here [1, C]
        "sigma":   0.1 + 0.5 * jnp.abs(
            jax.random.normal(ks[4], (1, hidden_dim), jnp.float32)),
        "omega":   jax.random.normal(ks[5], (1, hidden_dim), jnp.float32),
        "spa_w2":  conv_w(ks[6], hidden_dim, hidden_dim),
        "spa_b2":  conv_b(ks[7], hidden_dim),
        "fre_w2":  conv_w(ks[8], hidden_dim, hidden_dim),
        "fre_b2":  conv_b(ks[9], hidden_dim),
        "final_w": conv_w(ks[10], hidden_dim, out_channels),
        "final_b": conv_b(ks[11], out_channels),
    }


# ---------------------------------------------------------------------------
# Pure-JAX reference (HIGHEST matmul precision: Pallas f32 dots are not
# demoted to bf16, so this is the apples-to-apples comparison).
# ---------------------------------------------------------------------------
def tff_reference(pre_feature, post_feature, p):
    hp = jax.lax.Precision.HIGHEST

    def conv(x, w, b):   # x NCHW, w [Cin, Cout]
        y = jnp.einsum("bchw,cd->bdhw", x, w, precision=hp)
        return y + b[0][None, :, None, None]

    def gabor(x, sigma, omega):
        s = sigma[0][None, :, None, None]
        o = omega[0][None, :, None, None]
        return x * (jnp.exp(-s * x * x) * jnp.cos(o * x))

    pre = gabor(conv(pre_feature, p["pre_w1"], p["pre_b1"]),
                p["sigma"], p["omega"])
    post = gabor(conv(post_feature, p["post_w1"], p["post_b1"]),
                 p["sigma"], p["omega"])
    pre = conv(pre, p["spa_w2"], p["spa_b2"])
    post = conv(post, p["fre_w2"], p["fre_b2"])
    combined = jnp.einsum("bchw,bcwk->bchk", pre, post, precision=hp)
    return conv(combined, p["final_w"], p["final_b"])


if __name__ == "__main__":
    B, Cin, Chid, Cout, H, W = 2, 32, 32, 32, 8, 8
    key = jax.random.PRNGKey(0)
    k_pre, k_post, k_params = jax.random.split(key, 3)

    pre_feature = jax.random.normal(k_pre, (B, Cin, H, W), jnp.float32)
    post_feature = jax.random.normal(k_post, (B, Cin, H, W), jnp.float32)
    params = init_params(k_params, Cin, Chid, Cout)

    out = tff_forward(pre_feature, post_feature, params)
    out = jax.block_until_ready(out)

    ref = tff_reference(pre_feature, post_feature, params)
    ref = jax.block_until_ready(ref)

    assert out.shape == (B, Cout, H, W)
    rel_err = float(jnp.max(jnp.abs(out - ref)) /
                    (jnp.max(jnp.abs(ref)) + 1e-6))
    assert rel_err < 2e-2, f"mismatch vs JAX reference: rel_err={rel_err}"

    print("KERNEL_OK")
</pallas_src>

<mosaic_0001>
module attributes {stable_mosaic.version = 11 : i64} {
  func.func @_tff_fused_kernel(%arg0: i32, %arg1: memref<1x32x64xf32, #tpu.memory_space<vmem>>, %arg2: memref<1x32x64xf32, #tpu.memory_space<vmem>>, %arg3: memref<64x64xf32, #tpu.memory_space<vmem>>, %arg4: memref<1x64xf32, #tpu.memory_space<vmem>>, %arg5: memref<1x64xf32, #tpu.memory_space<vmem>>, %arg6: memref<1x64xf32, #tpu.memory_space<vmem>>, %arg7: memref<64x32xf32, #tpu.memory_space<vmem>>, %arg8: memref<1x32xf32, #tpu.memory_space<vmem>>, %arg9: memref<64x32xf32, #tpu.memory_space<vmem>>, %arg10: memref<1x32xf32, #tpu.memory_space<vmem>>, %arg11: memref<32x32xf32, #tpu.memory_space<vmem>>, %arg12: memref<32x1xf32, #tpu.memory_space<vmem>>, %arg13: memref<1x32x64xf32, #tpu.memory_space<vmem>>, %arg14: memref<64x64xf32, #tpu.memory_space<vmem>>) attributes {dimension_semantics = [#tpu.dimension_semantics<parallel>], iteration_bounds = array<i64: 2>, scalar_prefetch = 0 : i64, scratch_operands = 1 : i64, tpu.core_type = #tpu.core_type<tc>, window_params = [{transform_indices = @transform_0, window_bounds = array<i64: 1, 32, 64>}, {transform_indices = @transform_1, window_bounds = array<i64: 1, 32, 64>}, {pipeline_mode = #tpu.pipeline_mode<synchronous>, transform_indices = @transform_2, window_bounds = array<i64: 64, 64>}, {pipeline_mode = #tpu.pipeline_mode<synchronous>, transform_indices = @transform_3, window_bounds = array<i64: 1, 64>}, {pipeline_mode = #tpu.pipeline_mode<synchronous>, transform_indices = @transform_4, window_bounds = array<i64: 1, 64>}, {pipeline_mode = #tpu.pipeline_mode<synchronous>, transform_indices = @transform_5, window_bounds = array<i64: 1, 64>}, {pipeline_mode = #tpu.pipeline_mode<synchronous>, transform_indices = @transform_6, window_bounds = array<i64: 64, 32>}, {pipeline_mode = #tpu.pipeline_mode<synchronous>, transform_indices = @transform_7, window_bounds = array<i64: 1, 32>}, {pipeline_mode = #tpu.pipeline_mode<synchronous>, transform_indices = @transform_8, window_bounds = array<i64: 64, 32>}, {pipeline_mode = #tpu.pipeline_mode<synchronous>, transform_indices = @transform_9, window_bounds = array<i64: 1, 32>}, {pipeline_mode = #tpu.pipeline_mode<synchronous>, transform_indices = @transform_10, window_bounds = array<i64: 32, 32>}, {pipeline_mode = #tpu.pipeline_mode<synchronous>, transform_indices = @transform_11, window_bounds = array<i64: 32, 1>}, {transform_indices = @transform_12, window_bounds = array<i64: 1, 32, 64>}]} {
    %c0 = arith.constant 0 : index
    %c0_0 = arith.constant 0 : index
    %c0_1 = arith.constant 0 : index
    %0 = vector.load %arg1[%c0, %c0_0, %c0_1] : memref<1x32x64xf32, #tpu.memory_space<vmem>>, vector<1x32x64xf32>
    %1 = vector.shape_cast %0 : vector<1x32x64xf32> to vector<32x64xf32>
    %c0_2 = arith.constant 0 : index
    %c0_3 = arith.constant 0 : index
    %2 = vector.load %arg14[%c0_2, %c0_3] : memref<64x64xf32, #tpu.memory_space<vmem>>, vector<32x64xf32>
    tpu.vector_store %arg14[%c0_2, %c0_3], %1 {strides = array<i32>} : memref<64x64xf32, #tpu.memory_space<vmem>>, vector<32x64xf32>,
    %c0_4 = arith.constant 0 : index
    %c0_5 = arith.constant 0 : index
    %c0_6 = arith.constant 0 : index
    %3 = vector.load %arg2[%c0_4, %c0_5, %c0_6] : memref<1x32x64xf32, #tpu.memory_space<vmem>>, vector<1x32x64xf32>
    %4 = vector.shape_cast %3 : vector<1x32x64xf32> to vector<32x64xf32>
    %c32 = arith.constant 32 : index
    %c0_7 = arith.constant 0 : index
    %5 = vector.load %arg14[%c32, %c0_7] : memref<64x64xf32, #tpu.memory_space<vmem>>, vector<32x64xf32>
    tpu.vector_store %arg14[%c32, %c0_7], %4 {strides = array<i32>} : memref<64x64xf32, #tpu.memory_space<vmem>>, vector<32x64xf32>,
    %c0_8 = arith.constant 0 : index
    %c0_9 = arith.constant 0 : index
    %6 = vector.load %arg14[%c0_8, %c0_9] : memref<64x64xf32, #tpu.memory_space<vmem>>, vector<64x64xf32>
    %c0_10 = arith.constant 0 : index
    %c0_11 = arith.constant 0 : index
    %7 = vector.load %arg3[%c0_10, %c0_11] : memref<64x64xf32, #tpu.memory_space<vmem>>, vector<64x64xf32>
    %cst = arith.constant dense<0.000000e+00> : vector<64x64xf32>
    %8 = tpu.matmul %6, %7, %cst {dimension_numbers = #tpu.dot_dimension_numbers<[0], [0], [1], [1], [0, 1, 1, 1], [], []>} : vector<64x64xf32>, vector<64x64xf32>, vector<64x64xf32> -> vector<64x64xf32>
    %c0_12 = arith.constant 0 : index
    %c0_13 = arith.constant 0 : index
    %9 = vector.load %arg4[%c0_12, %c0_13] : memref<1x64xf32, #tpu.memory_space<vmem>>, vector<1x64xf32>
    %10 = vector.broadcast %9 : vector<1x64xf32> to vector<64x64xf32>
    %11 = arith.addf %8, %10 : vector<64x64xf32>
    %c0_14 = arith.constant 0 : index
    %c0_15 = arith.constant 0 : index
    %12 = vector.load %arg5[%c0_14, %c0_15] : memref<1x64xf32, #tpu.memory_space<vmem>>, vector<1x64xf32>
    %c0_16 = arith.constant 0 : index
    %c0_17 = arith.constant 0 : index
    %13 = vector.load %arg6[%c0_16, %c0_17] : memref<1x64xf32, #tpu.memory_space<vmem>>, vector<1x64xf32>
    %cst_18 = arith.constant 0.000000e+00 : f32
    %14 = vector.broadcast %cst_18 : f32 to vector<1x64xf32>
    %15 = arith.subf %14, %12 : vector<1x64xf32>
    %16 = vector.broadcast %15 : vector<1x64xf32> to vector<64x64xf32>
    %17 = arith.mulf %16, %11 : vector<64x64xf32>
    %18 = arith.mulf %17, %11 : vector<64x64xf32>
    %19 = math.exp %18 : vector<64x64xf32>
    %20 = vector.broadcast %13 : vector<1x64xf32> to vector<64x64xf32>
    %21 = arith.mulf %20, %11 : vector<64x64xf32>
    %22 = math.cos %21 : vector<64x64xf32>
    %23 = arith.mulf %19, %22 : vector<64x64xf32>
    %24 = arith.mulf %11, %23 : vector<64x64xf32>
    %c0_19 = arith.constant 0 : index
    %c0_20 = arith.constant 0 : index
    %25 = vector.load %arg7[%c0_19, %c0_20] : memref<64x32xf32, #tpu.memory_space<vmem>>, vector<64x32xf32>
    %cst_21 = arith.constant dense<0.000000e+00> : vector<64x32xf32>
    %26 = tpu.matmul %24, %25, %cst_21 {dimension_numbers = #tpu.dot_dimension_numbers<[1], [0], [0], [1], [0, 0, 1, 1], [], []>} : vector<64x64xf32>, vector<64x32xf32>, vector<64x32xf32> -> vector<64x32xf32>
    %c0_22 = arith.constant 0 : index
    %c0_23 = arith.constant 0 : index
    %27 = vector.load %arg8[%c0_22, %c0_23] : memref<1x32xf32, #tpu.memory_space<vmem>>, vector<1x32xf32>
    %28 = vector.broadcast %27 : vector<1x32xf32> to vector<64x32xf32>
    %29 = arith.addf %26, %28 : vector<64x32xf32>
    %c0_24 = arith.constant 0 : index
    %c0_25 = arith.constant 0 : index
    %30 = vector.load %arg9[%c0_24, %c0_25] : memref<64x32xf32, #tpu.memory_space<vmem>>, vector<64x32xf32>
    %cst_26 = arith.constant dense<0.000000e+00> : vector<64x32xf32>
    %31 = tpu.matmul %24, %30, %cst_26 {dimension_numbers = #tpu.dot_dimension_numbers<[1], [0], [0], [1], [0, 0, 1, 1], [], []>} : vector<64x64xf32>, vector<64x32xf32>, vector<64x32xf32> -> vector<64x32xf32>
    %c0_27 = arith.constant 0 : index
    %c0_28 = arith.constant 0 : index
    %32 = vector.load %arg10[%c0_27, %c0_28] : memref<1x32xf32, #tpu.memory_space<vmem>>, vector<1x32xf32>
    %33 = vector.broadcast %32 : vector<1x32xf32> to vector<64x32xf32>
    %34 = arith.addf %31, %33 : vector<64x32xf32>
    %35 = vector.shape_cast %29 : vector<64x32xf32> to vector<8x8x32xf32>
    %36 = vector.shape_cast %34 : vector<64x32xf32> to vector<8x8x32xf32>
    %37 = vector.extract_strided_slice %35 {offsets = [0, 0, 0], sizes = [8, 1, 32], strides = [1, 1, 1]} : vector<8x8x32xf32> to vector<8x1x32xf32>
    %38 = vector.extract_strided_slice %36 {offsets = [0, 0, 0], sizes = [1, 8, 32], strides = [1, 1, 1]} : vector<8x8x32xf32> to vector<1x8x32xf32>
    %39 = vector.broadcast %37 : vector<8x1x32xf32> to vector<8x8x32xf32>
    %40 = vector.broadcast %38 : vector<1x8x32xf32> to vector<8x8x32xf32>
    %41 = arith.mulf %39, %40 : vector<8x8x32xf32>
    %42 = vector.extract_strided_slice %35 {offsets = [0, 1, 0], sizes = [8, 1, 32], strides = [1, 1, 1]} : vector<8x8x32xf32> to vector<8x1x32xf32>
    %43 = vector.extract_strided_slice %36 {offsets = [1, 0, 0], sizes = [1, 8, 32], strides = [1, 1, 1]} : vector<8x8x32xf32> to vector<1x8x32xf32>
    %44 = vector.broadcast %42 : vector<8x1x32xf32> to vector<8x8x32xf32>
    %45 = vector.broadcast %43 : vector<1x8x32xf32> to vector<8x8x32xf32>
    %46 = arith.mulf %44, %45 : vector<8x8x32xf32>
    %47 = vector.extract_strided_slice %35 {offsets = [0, 2, 0], sizes = [8, 1, 32], strides = [1, 1, 1]} : vector<8x8x32xf32> to vector<8x1x32xf32>
    %48 = vector.extract_strided_slice %36 {offsets = [2, 0, 0], sizes = [1, 8, 32], strides = [1, 1, 1]} : vector<8x8x32xf32> to vector<1x8x32xf32>
    %49 = vector.broadcast %47 : vector<8x1x32xf32> to vector<8x8x32xf32>
    %50 = vector.broadcast %48 : vector<1x8x32xf32> to vector<8x8x32xf32>
    %51 = arith.mulf %49, %50 : vector<8x8x32xf32>
    %52 = arith.addf %41, %51 : vector<8x8x32xf32>
    %53 = vector.extract_strided_slice %35 {offsets = [0, 3, 0], sizes = [8, 1, 32], strides = [1, 1, 1]} : vector<8x8x32xf32> to vector<8x1x32xf32>
    %54 = vector.extract_strided_slice %36 {offsets = [3, 0, 0], sizes = [1, 8, 32], strides = [1, 1, 1]} : vector<8x8x32xf32> to vector<1x8x32xf32>
    %55 = vector.broadcast %53 : vector<8x1x32xf32> to vector<8x8x32xf32>
    %56 = vector.broadcast %54 : vector<1x8x32xf32> to vector<8x8x32xf32>
    %57 = arith.mulf %55, %56 : vector<8x8x32xf32>
    %58 = arith.addf %46, %57 : vector<8x8x32xf32>
    %59 = vector.extract_strided_slice %35 {offsets = [0, 4, 0], sizes = [8, 1, 32], strides = [1, 1, 1]} : vector<8x8x32xf32> to vector<8x1x32xf32>
    %60 = vector.extract_strided_slice %36 {offsets = [4, 0, 0], sizes = [1, 8, 32], strides = [1, 1, 1]} : vector<8x8x32xf32> to vector<1x8x32xf32>
    %61 = vector.broadcast %59 : vector<8x1x32xf32> to vector<8x8x32xf32>
    %62 = vector.broadcast %60 : vector<1x8x32xf32> to vector<8x8x32xf32>
    %63 = arith.mulf %61, %62 : vector<8x8x32xf32>
    %64 = arith.addf %52, %63 : vector<8x8x32xf32>
    %65 = vector.extract_strided_slice %35 {offsets = [0, 5, 0], sizes = [8, 1, 32], strides = [1, 1, 1]} : vector<8x8x32xf32> to vector<8x1x32xf32>
    %66 = vector.extract_strided_slice %36 {offsets = [5, 0, 0], sizes = [1, 8, 32], strides = [1, 1, 1]} : vector<8x8x32xf32> to vector<1x8x32xf32>
    %67 = vector.broadcast %65 : vector<8x1x32xf32> to vector<8x8x32xf32>
    %68 = vector.broadcast %66 : vector<1x8x32xf32> to vector<8x8x32xf32>
    %69 = arith.mulf %67, %68 : vector<8x8x32xf32>
    %70 = arith.addf %58, %69 : vector<8x8x32xf32>
    %71 = vector.extract_strided_slice %35 {offsets = [0, 6, 0], sizes = [8, 1, 32], strides = [1, 1, 1]} : vector<8x8x32xf32> to vector<8x1x32xf32>
    %72 = vector.extract_strided_slice %36 {offsets = [6, 0, 0], sizes = [1, 8, 32], strides = [1, 1, 1]} : vector<8x8x32xf32> to vector<1x8x32xf32>
    %73 = vector.broadcast %71 : vector<8x1x32xf32> to vector<8x8x32xf32>
    %74 = vector.broadcast %72 : vector<1x8x32xf32> to vector<8x8x32xf32>
    %75 = arith.mulf %73, %74 : vector<8x8x32xf32>
    %76 = arith.addf %64, %75 : vector<8x8x32xf32>
    %77 = vector.extract_strided_slice %35 {offsets = [0, 7, 0], sizes = [8, 1, 32], strides = [1, 1, 1]} : vector<8x8x32xf32> to vector<8x1x32xf32>
    %78 = vector.extract_strided_slice %36 {offsets = [7, 0, 0], sizes = [1, 8, 32], strides = [1, 1, 1]} : vector<8x8x32xf32> to vector<1x8x32xf32>
    %79 = vector.broadcast %77 : vector<8x1x32xf32> to vector<8x8x32xf32>
    %80 = vector.broadcast %78 : vector<1x8x32xf32> to vector<8x8x32xf32>
    %81 = arith.mulf %79, %80 : vector<8x8x32xf32>
    %82 = arith.addf %70, %81 : vector<8x8x32xf32>
    %83 = arith.addf %76, %82 : vector<8x8x32xf32>
    %84 = vector.shape_cast %83 : vector<8x8x32xf32> to vector<64x32xf32>
    %c0_29 = arith.constant 0 : index
    %c0_30 = arith.constant 0 : index
    %85 = vector.load %arg11[%c0_29, %c0_30] : memref<32x32xf32, #tpu.memory_space<vmem>>, vector<32x32xf32>
    %cst_31 = arith.constant dense<0.000000e+00> : vector<32x64xf32>
    %86 = tpu.matmul %85, %84, %cst_31 {dimension_numbers = #tpu.dot_dimension_numbers<[1], [1], [0], [0], [0, 0, 1, 0], [], []>} : vector<32x32xf32>, vector<64x32xf32>, vector<32x64xf32> -> vector<32x64xf32>
    %c0_32 = arith.constant 0 : index
    %c0_33 = arith.constant 0 : index
    %87 = vector.load %arg12[%c0_32, %c0_33] : memref<32x1xf32, #tpu.memory_space<vmem>>, vector<32x1xf32>
    %88 = vector.broadcast %87 : vector<32x1xf32> to vector<32x64xf32>
    %89 = arith.addf %86, %88 : vector<32x64xf32>
    %c0_34 = arith.constant 0 : index
    %c0_35 = arith.constant 0 : index
    %c0_36 = arith.constant 0 : index
    %90 = vector.load %arg13[%c0_34, %c0_35, %c0_36] : memref<1x32x64xf32, #tpu.memory_space<vmem>>, vector<1x32x64xf32>
    %91 = vector.shape_cast %90 : vector<1x32x64xf32> to vector<32x64xf32>
    %92 = vector.shape_cast %89 : vector<32x64xf32> to vector<1x32x64xf32>
    tpu.vector_store %arg13[%c0_34, %c0_35, %c0_36], %92 {strides = array<i32>} : memref<1x32x64xf32, #tpu.memory_space<vmem>>, vector<1x32x64xf32>,
    return
  }
  func.func @transform_0(%arg0: i32) -> (i32, i32, i32) {
    %c0_i32 = arith.constant 0 : i32
    %c0_i32_0 = arith.constant 0 : i32
    %c0_i32_1 = arith.constant 0 : i32
    return %arg0, %c0_i32, %c0_i32_0 : i32, i32, i32
  }
  func.func @transform_1(%arg0: i32) -> (i32, i32, i32) {
    %c0_i32 = arith.constant 0 : i32
    %c0_i32_0 = arith.constant 0 : i32
    %c0_i32_1 = arith.constant 0 : i32
    return %arg0, %c0_i32, %c0_i32_0 : i32, i32, i32
  }
  func.func @transform_2(%arg0: i32) -> (i32, i32) {
    %c0_i32 = arith.constant 0 : i32
    %c0_i32_0 = arith.constant 0 : i32
    %c0_i32_1 = arith.constant 0 : i32
    return %c0_i32, %c0_i32_0 : i32, i32
  }
  func.func @transform_3(%arg0: i32) -> (i32, i32) {
    %c0_i32 = arith.constant 0 : i32
    %c0_i32_0 = arith.constant 0 : i32
    %c0_i32_1 = arith.constant 0 : i32
    return %c0_i32, %c0_i32_0 : i32, i32
  }
  func.func @transform_4(%arg0: i32) -> (i32, i32) {
    %c0_i32 = arith.constant 0 : i32
    %c0_i32_0 = arith.constant 0 : i32
    %c0_i32_1 = arith.constant 0 : i32
    return %c0_i32, %c0_i32_0 : i32, i32
  }
  func.func @transform_5(%arg0: i32) -> (i32, i32) {
    %c0_i32 = arith.constant 0 : i32
    %c0_i32_0 = arith.constant 0 : i32
    %c0_i32_1 = arith.constant 0 : i32
    return %c0_i32, %c0_i32_0 : i32, i32
  }
  func.func @transform_6(%arg0: i32) -> (i32, i32) {
    %c0_i32 = arith.constant 0 : i32
    %c0_i32_0 = arith.constant 0 : i32
    %c0_i32_1 = arith.constant 0 : i32
    return %c0_i32, %c0_i32_0 : i32, i32
  }
  func.func @transform_7(%arg0: i32) -> (i32, i32) {
    %c0_i32 = arith.constant 0 : i32
    %c0_i32_0 = arith.constant 0 : i32
    %c0_i32_1 = arith.constant 0 : i32
    return %c0_i32, %c0_i32_0 : i32, i32
  }
  func.func @transform_8(%arg0: i32) -> (i32, i32) {
    %c0_i32 = arith.constant 0 : i32
    %c0_i32_0 = arith.constant 0 : i32
    %c0_i32_1 = arith.constant 0 : i32
    return %c0_i32, %c0_i32_0 : i32, i32
  }
  func.func @transform_9(%arg0: i32) -> (i32, i32) {
    %c0_i32 = arith.constant 0 : i32
    %c0_i32_0 = arith.constant 0 : i32
    %c0_i32_1 = arith.constant 0 : i32
    return %c0_i32, %c0_i32_0 : i32, i32
  }
  func.func @transform_10(%arg0: i32) -> (i32, i32) {
    %c0_i32 = arith.constant 0 : i32
    %c0_i32_0 = arith.constant 0 : i32
    %c0_i32_1 = arith.constant 0 : i32
    return %c0_i32, %c0_i32_0 : i32, i32
  }
  func.func @transform_11(%arg0: i32) -> (i32, i32) {
    %c0_i32 = arith.constant 0 : i32
    %c0_i32_0 = arith.constant 0 : i32
    %c0_i32_1 = arith.constant 0 : i32
    return %c0_i32, %c0_i32_0 : i32, i32
  }
  func.func @transform_12(%arg0: i32) -> (i32, i32, i32) {
    %c0_i32 = arith.constant 0 : i32
    %c0_i32_0 = arith.constant 0 : i32
    %c0_i32_1 = arith.constant 0 : i32
    return %arg0, %c0_i32, %c0_i32_0 : i32, i32, i32
  }
}

</mosaic_0001>

<bundles_post_ra>
// kernel: tpu_custom_call.1
= control target key start
LH: loop header
LB: loop body
LE: loop exit
PB: predicated region body
PF: predicated region fallthrough
CT: control target
= control target key end

     0   :  { %17 = vsyncpa [#allocation4], 0  ;;  %s4361_s0 = inlined_call_operand.vmem [shape: f32[2,32,64], index: 0, kind: input, shape index: {}]   ;;  %s4362_s1 = inlined_call_operand.vmem [shape: f32[2,32,64], index: 1, kind: input, shape index: {}]   ;;  %s4363_s2 = inlined_call_operand.vmem [shape: f32[64,64], index: 2, kind: input, shape index: {}]   ;;  %s4364_s3 = inlined_call_operand.vmem [shape: f32[1,64], index: 3, kind: input, shape index: {}]   ;;  %s4365_s4 = inlined_call_operand.vmem [shape: f32[1,64], index: 4, kind: input, shape index: {}]   ;;  %s4366_s5 = inlined_call_operand.vmem [shape: f32[1,64], index: 5, kind: input, shape index: {}]   ;;  %s4367_s6 = inlined_call_operand.vmem [shape: f32[64,32], index: 6, kind: input, shape index: {}]   ;;  %s4368_s7 = inlined_call_operand.vmem [shape: f32[1,32], index: 7, kind: input, shape index: {}]   ;;  %s4369_s8 = inlined_call_operand.vmem [shape: f32[64,32], index: 8, kind: input, shape index: {}]   ;;  %s4370_s9 = inlined_call_operand.vmem [shape: f32[1,32], index: 9, kind: input, shape index: {}]   ;;  %s4371_s10 = inlined_call_operand.vmem [shape: f32[32,32], index: 10, kind: input, shape index: {}]   ;;  %s4372_s11 = inlined_call_operand.vmem [shape: f32[32,1], index: 11, kind: input, shape index: {}]   ;;  %s4373_s12 = inlined_call_operand.hbm [shape: f32[2,32,64], index: 12, kind: output, shape index: {}]  }
   0x1   :  { %19 = vsyncpa [#allocation4 + $0x1], 0  ;;  %s3007_s21 = smov 0   ;;  %s3009_s22 = smov 0  }
   0x2   :  { %s3011_s23 = smov 0   ;;  %s3013_s24 = smov 0  }
   0x3 LB: > { %4424 = sst [smem:[#allocation6_spill]] %s2926_s23  ;;  %s3028_s25 = sadd.s32 4294967295, %s2930_s24   ;;  %s2930_s24 = sphi %s3013_s24, %s4527_s24   ;;  %s2926_s23 = sphi %s3011_s23, %s4529_s23   ;;  %s2922_s22 = sphi %s3009_s22, %s4531_s22   ;;  %s2918_s21 = sphi %s3007_s21, %s4530_s21  }
   0x4   : > { %s2410_s26 = sadd.s32 4294967294, %s2930_s24   ;;  %s3032_s27 = sadd.s32 1, %s2930_s24  }
   0x5   : > { %4425 = sst [smem:[#allocation7_spill]] %s3032_s27  ;;  %s294_s28 = sadd.s32 1, %s2926_s23 }
   0x6   : > { %s291_s29 = ssub.s32 %s2930_s24, %s3032_s27  ;;  %p304_p0 = scmp.ne.s32.totalorder %s2926_s23, %s2922_s22 }
   0x7   : > { %p292_p1 = scmp.eq.s32.totalorder %s291_s29, 0  ;;  %p305_p2 = scmp.eq.s32.totalorder %s3028_s25, 1 }
   0x8   : > { %p310_p3 = scmp.ne.s32.totalorder %s2922_s22, %s2918_s21  ;;  %p311_p4 = scmp.eq.s32.totalorder %s2410_s26, 1 }
   0x9   : > { %s3043_s30 = scalar_select %p292_p1, %s2926_s23, %s294_s28  }
   0xa   : > { %p3045_p5 = por %p305_p2, %p304_p0  ;;  %p3049_p6 = por %p311_p4, %p310_p3 }
   0xb   : > { %4426 = sst [smem:[#allocation8_spill]] %s3043_s30  ;;  %p2413_p7 = scmp.ge.s32.totalorder %s2930_s24, 1 }
   0xc   : > { %p375_p8 = scmp.lt.s32.totalorder %s2930_s24, 3 }
   0xe   : > { %p376_p9 = pnand %p2413_p7, %p375_p8 }
  0x10   : > { %379 = sbr.rel (%p376_p9) target bundleno = 1121 (0x461), region = 68 }
  0x17   : > { %p422_p10 = scmp.lt.s32.totalorder %s3028_s25, 1  ;;  %v457_v0 = vld [vmem:[%s4363_s2] sm:$0xff]  ;;  %v458_v1 = vld [vmem:[%s4363_s2 + $0x8] sm:$0xff]  ;;  %v459_v2 = vld [vmem:[%s4363_s2 + $0x10] sm:$0xff]  ;;  %vm4423_vm0 = vcmask 523264   ;;  %v637_v57 = vlaneseq  ;;  %s2939_s28 = smov [#allocation3]  }
  0x18   : > { %v2665_v3 = vpack.c.bf16 %v458_v1, %v457_v0  ;;  %v460_v4 = vld [vmem:[%s4363_s2 + $0x18] sm:$0xff]  ;;  %v461_v6 = vld [vmem:[%s4363_s2 + $0x20] sm:$0xff]  ;;  %v462_v7 = vld [vmem:[%s4363_s2 + $0x28] sm:$0xff]  ;;  %v4384_v1 = vmov 683565275   ;;  %s2872_s23 = sshll.u32 %s2939_s28, 4  ;;  %s2873_s23 = int_to_ptr.vmem [resolvable:$false] %s2872_s23 }
  0x19   : > { %s423_s29 = scalar_select %p422_p10, %s3028_s25, 1  ;;  %v2669_v5 = vpack.c.bf16 %v460_v4, %v459_v2  ;;  %v2673_v8 = vpack.c.bf16 %v462_v7, %v461_v6  ;;  %v463_v17 = vld [vmem:[%s4363_s2 + $0x30] sm:$0xff]  ;;  %v464_v18 = vld [vmem:[%s4363_s2 + $0x38] sm:$0xff]  ;;  %v3106_v36 = vld [vmem:[%s4364_s3] ss:$0 sm:$0xff] }
  0x1a   : > { %2666 = vmatprep.subr.bf16.mxu0 %v2665_v3  ;;  %v2677_v20 = vpack.c.bf16 %v464_v18, %v463_v17  ;;  %v3111_v38 = vld [vmem:[%s4366_s5] ss:$0 sm:$0xff]  ;;  %v4392_v17 = vmov 1326507024   ;;  %s2874_s30 = scalar_lea.vmem %s2873_s23, 1024 }
  0x1b   : > { %s2496_s17 = sshll.u32 %s423_s29, 5  ;;  %2668 = vmatpush3.bf16.msra.mxu0 %v2665_v3  ;;  %v4382_v3 = vmov 2475754826   ;;  %s419_s29 = sand.u32 1, %s2922_s22  }
  0x1c   : > { %s426_s20 = scalar_lea.vmem %s4361_s0, %s2496_s17  ;;  %s431_s27 = scalar_lea.vmem %s4362_s1, %s2496_s17  ;;  %2670 = vmatprep.subr.bf16.mxu0 %v2669_v5 }
  0x1d   : > { %v432_v9 = vld [vmem:[%s426_s20] sm:$0xff]  ;;  %v433_v10 = vld [vmem:[%s426_s20 + $0x8] sm:$0xff]  ;;  %v434_v11 = vld [vmem:[%s426_s20 + $0x10] sm:$0xff]  ;;  %s2414_s15 = sshll.u32 %s419_s29, 5  ;;  %s2498_s17 = sshll.u32 %s3028_s25, 9 }
  0x1e   : > { %437 = vst.msk [vmem:[#allocation2] sm:$0xff] %vm4423_vm0, %v432_v9  ;;  %438 = vst.msk [vmem:[#allocation2 + $0x8] sm:$0xff] %vm4423_vm0, %v433_v10  ;;  %v435_v12 = vld [vmem:[%s426_s20 + $0x18] sm:$0xff]  ;;  %v441_v13 = vld [vmem:[%s431_s27] sm:$0xff]  ;;  %s4316_s20 = scalar_lea.hbm %s4373_s12, %s2498_s17  ;;  %s4320_s25 = scalar_lea.sflag [#allocation4], %s419_s29 }
  0x1f   : > { %439 = vst.msk [vmem:[#allocation2 + $0x10] sm:$0xff] %vm4423_vm0, %v434_v11  ;;  %v442_v14 = vld [vmem:[%s431_s27 + $0x8] sm:$0xff]  ;;  %440 = vst.msk [vmem:[#allocation2 + $0x18] sm:$0xff] %vm4423_vm0, %v435_v12  ;;  %v443_v15 = vld [vmem:[%s431_s27 + $0x10] sm:$0xff]  ;;  %2672 = vmatpush3.bf16.msra.mxu0 %v2669_v5  ;;  %v4386_v11 = vmov 2102212464  }
  0x20   : > { %445 = vst.msk [vmem:[#allocation2 + $0x20] sm:$0xff] %vm4423_vm0, %v441_v13  ;;  %446 = vst.msk [vmem:[#allocation2 + $0x28] sm:$0xff] %vm4423_vm0, %v442_v14  ;;  %v444_v16 = vld [vmem:[%s431_s27 + $0x18] sm:$0xff]  ;;  %2674 = vmatprep.subr.bf16.mxu0 %v2673_v8  ;;  %v4395_v14 = vmov 920167782   ;;  %s421_s27 = scalar_lea.vmem [#allocation3], %s2414_s15 }
  0x21   : > { %447 = vst.msk [vmem:[#allocation2 + $0x30] sm:$0xff] %vm4423_vm0, %v443_v15  ;;  %448 = vst.msk [vmem:[#allocation2 + $0x38] sm:$0xff] %vm4423_vm0, %v444_v16  ;;  %s2336_s16 = sshll.u32 %s421_s27, 4  ;;  %s4311_s16 = int_to_ptr.vmem [resolvable:$true] %s2336_s16 }
  0x22   : > { %s2868_s26 = scalar_lea.vmem %s4311_s16, 512  ;;  %p2875_p0 = scmp.lt.s32.totalorder %s4311_s16, %s2873_s23 }
  0x23   : > { %2676 = vmatpush3.bf16.msra.mxu0 %v2673_v8  ;;  %v4388_v8 = vmov 2131351028   ;;  %p2869_p11 = scmp.ne.s32.totalorder %s4311_s16, %s2868_s26  ;;  %p2876_p1 = scmp.lt.s32.totalorder %s2874_s30, %s2868_s26 }
  0x24   : > { %2678 = vmatprep.subr.bf16.mxu0 %v2677_v20 }
  0x25   : > { %v449_v19 = vld [vmem:[#allocation2] sm:$0xff]  ;;  %v450_v21 = vld [vmem:[#allocation2 + $0x8] sm:$0xff]  ;;  %p2870_p12 = pnand %p2869_p11, %p3045_p5  ;;  %p2877_p2 = por %p2876_p1, %p2875_p0 }
  0x26   : > { %472 = vxpose.xlu0.b32.start [1/8] (short) (narrow) %v449_v19, 64  ;;  %v451_v22 = vld [vmem:[#allocation2 + $0x10] sm:$0xff]  ;;  %v452_v23 = vld [vmem:[#allocation2 + $0x18] sm:$0xff] }
  0x27   : > { %2680 = vmatpush3.bf16.msra.mxu0 %v2677_v20  ;;  %v453_v24 = vld [vmem:[#allocation2 + $0x20] sm:$0xff]  ;;  %v454_v25 = vld [vmem:[#allocation2 + $0x28] sm:$0xff]  ;;  %p2871_p13 = pneg %p2870_p12 }
  0x28   : > { %v455_v26 = vld [vmem:[#allocation2 + $0x30] sm:$0xff]  ;;  %v456_v27 = vld [vmem:[#allocation2 + $0x38] sm:$0xff] }
  0x29   : > { %p2878_p3 = pnand %p2877_p2, %p2871_p13 }
  0x2a   : > { %473 = vxpose.xlu0.b32.cont [2/8] (short) (narrow) %v450_v21, 64 }
  0x2e   : > { %474 = vxpose.xlu0.b32.cont [3/8] (short) (narrow) %v451_v22, 64 }
  0x32   : > { %475 = vxpose.xlu0.b32.cont [4/8] (short) (narrow) %v452_v23, 64 }
  0x36   : > { %476 = vxpose.xlu0.b32.cont [5/8] (short) (narrow) %v453_v24, 64 }
  0x3a   : > { %477 = vxpose.xlu0.b32.cont [6/8] (short) (narrow) %v454_v25, 64 }
  0x3e   : > { %478 = vxpose.xlu0.b32.cont [7/8] (short) (narrow) %v455_v26, 64 }
  0x42   : > { %479 = vxpose.xlu0.b32.end [8/8] (short) (narrow) %v456_v27, 64 }
  0xa6   : > { %v488_v28 = vpop.trf.xlu0 }
  0xa7   : > { %2575 = vmatprep.mubr.msk.f32.mxu0 %vm4423_vm0, %v488_v28 }
  0xaa   : > { %v489_v29 = vpop.trf.xlu0 }
  0xab   : > { %2576 = vmatmul.mubr.msk.f32.vlgmr.msra.gmra.mrb[0].mxu0 %vm4423_vm0, %v489_v29 }
  0xae   : > { %v490_v30 = vpop.trf.xlu0 }
  0xaf   : > { %2578 = vmatprep.mubr.msk.f32.mxu0 %vm4423_vm0, %v490_v30 }
  0xb2   : > { %v491_v31 = vpop.trf.xlu0 }
  0xb3   : > { %2579 = vmatmul.mubr.msk.f32.gmra.mrb[2].mxu0 %vm4423_vm0, %v491_v31 }
  0xb6   : > { %v492_v32 = vpop.trf.xlu0 }
  0xb7   : > { %2581 = vmatprep.mubr.msk.f32.mxu0 %vm4423_vm0, %v492_v32 }
  0xba   : > { %v493_v33 = vpop.trf.xlu0 }
  0xbb   : > { %2582 = vmatmul.mubr.msk.f32.gmra.mrb[4].mxu0 %vm4423_vm0, %v493_v33 }
  0xbe   : > { %v494_v34 = vpop.trf.xlu0 }
  0xbf   : > { %2584 = vmatprep.mubr.msk.f32.mxu0 %vm4423_vm0, %v494_v34 }
  0xc2   : > { %v495_v35 = vpop.trf.xlu0 }
  0xc3   : > { %2585 = vmatmul.mubr.msk.f32.gmra.mrb[6].mxu0 %vm4423_vm0, %v495_v35 }
 0x17e   : > { %v2577_v37 = vpop.f32.mrb[0].mxu0 }
 0x17f   : > { %v3114_v39 = vadd.f32 %v2577_v37, %v3106_v36  ;;  %v594_v40 = vpop.f32.mrb[1].mxu0 }
 0x180   : > { %v3136_v58 = vadd.f32 %v3106_v36, %v594_v40 }
 0x181   : > { %4429 = vst [vmem:[#allocation9_spill] sm:$0xff] %v3114_v39  ;;  %v3118_v41 = vmul.f32 %v3111_v38, %v3114_v39 }
 0x182   : > { %4432 = vst [vmem:[#allocation12_spill] sm:$0xff] %v3136_v58 }
 0x183   : > { %v4381_v42 = vand.u32 2147483647, %v3118_v41  ;;  %v794_v43 = vand.u32 2139095040, %v3118_v41 }
 0x185   : > { %v795_v44 = vshrl.u32 %v794_v43, 23  ;;  %v798_v47 = vand.u32 8388607, %v4381_v42 }
 0x186   : > { %v2580_v45 = vpop.f32.mrb[2].mxu0 }
 0x187   : > { %v2433_v46 = vadd.s32 4294967169, %v795_v44  ;;  %v3125_v48 = vadd.f32 %v2580_v45, %v3106_v36  ;;  %v604_v49 = vpop.f32.mrb[3].mxu0  ;;  %v799_v52 = vor.u32 8388608, %v798_v47 }
 0x188   : > { %v3132_v53 = vadd.f32 %v3106_v36, %v604_v49 }
 0x189   : > { %4430 = vst [vmem:[#allocation10_spill] sm:$0xff] %v3125_v48  ;;  %v801_v50 = vadd.s32 1, %v2433_v46  ;;  %v3129_v51 = vmul.f32 %v3111_v38, %v3125_v48  ;;  %v3140_v62 = vshll.u32 %v799_v52, 8  ;;  %v633_v52 = vld [vmem:[%s4365_s4] sm:$0x1] }
 0x18a   : > { %4431 = vst [vmem:[#allocation11_spill] sm:$0xff] %v3132_v53  ;;  %v3144_v63 = vmul.f32 %v3111_v38, %v3132_v53 }
 0x18b   : > { %vm802_vm1 = vcmp.gt.s32.totalorder %v801_v50, 0  ;;  %v1000_v55 = vand.u32 2139095040, %v3129_v51  ;;  %v4377_v5 = vand.u32 2147483647, %v3129_v51 }
 0x18c   : > { %v803_v54 = vsel %vm802_vm1, %v801_v50, 0 }
 0x18d   : > { %v805_v56 = vand.u32 31, %v803_v54  ;;  %v804_v60 = vshrl.u32 %v803_v54, 5  ;;  %v1001_v6 = vshrl.u32 %v1000_v55, 23  ;;  %v1004_v28 = vand.u32 8388607, %v4377_v5 }
 0x18e   : > { %v3138_v59 = vpop.f32.mrb[4].mxu0 }
 0x18f   : > { %v806_v61 = vsub.s32 32, %v805_v56  ;;  %v3146_v0 = vpop.f32.mrb[5].mxu0  ;;  %v808_v2 = vshll.u32 %v4384_v1, %v805_v56  ;;  %v811_v4 = vshll.u32 %v4382_v3, %v805_v56  ;;  %v814_v10 = vshll.u32 %v4388_v8, %v805_v56 }
 0x190   : > { %v817_v13 = vshll.u32 %v4386_v11, %v805_v56  ;;  %v820_v16 = vshll.u32 %v4395_v14, %v805_v56  ;;  %vm823_vm2 = vcmp.lt.s32.totalorder %v804_v60, 1  ;;  %vm826_vm3 = vcmp.lt.s32.totalorder %v804_v60, 4 }
 0x191   : > { %v809_v7 = vshrl.u32 %v4382_v3, %v806_v61  ;;  %v812_v9 = vshrl.u32 %v4388_v8, %v806_v61  ;;  %v815_v12 = vshrl.u32 %v4386_v11, %v806_v61  ;;  %v818_v15 = vshrl.u32 %v4395_v14, %v806_v61 }
 0x192   : > { %v821_v18 = vshrl.u32 %v4392_v17, %v806_v61  ;;  %v2441_v24 = vadd.s32 4294967169, %v1001_v6  ;;  %v807_v29 = vshrl.u32 %v4384_v1, %v806_v61  ;;  %vm825_vm4 = vcmp.lt.s32.totalorder %v804_v60, 3 }
 0x193   : > { %v810_v19 = vor.u32 %v809_v7, %v808_v2  ;;  %v813_v20 = vor.u32 %v812_v9, %v811_v4  ;;  %v816_v21 = vor.u32 %v815_v12, %v814_v10  ;;  %v819_v22 = vor.u32 %v818_v15, %v817_v13 }
 0x194   : > { %v822_v23 = vor.u32 %v821_v18, %v820_v16  ;;  %vm824_vm5 = vcmp.lt.s32.totalorder %v804_v60, 2  ;;  %v1007_v35 = vadd.s32 1, %v2441_v24  ;;  %v1005_v54 = vor.u32 8388608, %v1004_v28 }
 0x195   : > { %v828_v25 = vsel %vm826_vm3, %v816_v21, 2102212464  ;;  %v831_v26 = vsel %vm823_vm2, %v810_v19, %v813_v20  ;;  %v835_v27 = vsel %vm823_vm2, %v813_v20, %v816_v21  ;;  %v832_v30 = vsel %vm826_vm3, %v819_v22, 920167782 }
 0x196   : > { %v836_v31 = vsel %vm826_vm3, %v822_v23, 1326507024  ;;  %v3164_v32 = vpop.f32.mrb[6].mxu0  ;;  %v833_v33 = vsel %vm825_vm4, %v816_v21, %v832_v30  ;;  %v827_v40 = vsel %vm823_vm2, %v807_v29, %v810_v19  ;;  %v829_v43 = vsel %vm825_vm4, %v813_v20, %v828_v25 }
 0x197   : > { %v837_v34 = vsel %vm825_vm4, %v819_v22, %v836_v31  ;;  %v3166_v37 = vpop.f32.mrb[7].mxu0  ;;  %v834_v44 = vsel %vm824_vm5, %v831_v26, %v833_v33  ;;  %vm1008_vm6 = vcmp.gt.s32.totalorder %v1007_v35, 0  ;;  %v830_v55 = vsel %vm824_vm5, %v827_v40, %v829_v43 }
 0x198   : > { %v838_v45 = vsel %vm824_vm5, %v835_v27, %v837_v34  ;;  %v3174_v49 = vmul.u32.u64.low %v3140_v62, %v834_v44  ;;  %v3175_v50 = vmul.u32.u64.high %v3140_v62, %v834_v44, %v3174_v49  ;;  %v1009_v56 = vsel %vm1008_vm6, %v1007_v35, 0 }
 0x199   : > { %v3170_v46 = vmul.u32.u64.low %v3140_v62, %v838_v45  ;;  %v3171_v47 = vmul.u32.u64.high %v3140_v62, %v838_v45, %v3170_v46  ;;  %v897_v60 = vand.u32 2139095040, %v3144_v63  ;;  %v3182_v61 = vshrl.u32 %v637_v57, 7 }
 0x19a   : > { %v1011_v2 = vand.u32 31, %v1009_v56  ;;  %v635_v4 = vsub.f32 0.0, %v633_v52  ;;  %v849_v6 = vadd.s32 1, %v3175_v50  ;;  %v3189_v7 = vmul.f32 %v3111_v38, %v3136_v58 }
 0x19b   : > { %4433 = vst [vmem:[#allocation13_spill] sm:$0xff] %v3182_v61  ;;  %vm848_vm7 = vc.u32 %v3171_v47, %v3174_v49  ;;  %v846_v9 = vmul.u32 %v3140_v62, %v830_v55  ;;  %v1010_v10 = vshrl.u32 %v1009_v56, 5  ;;  %v1045_v13 = vshll.u32 %v1005_v54, 8 }
 0x19c   : > { %4434 = vst [vmem:[#allocation14_spill] sm:$0xff] %v3189_v7  ;;  %v1012_v12 = vsub.s32 32, %v1011_v2  ;;  %v850_v15 = vsel %vm848_vm7, %v849_v6, %v3175_v50  ;;  %v1014_v57 = vshll.u32 %v4384_v1, %v1011_v2  ;;  %v1017_v16 = vshll.u32 %v4382_v3, %v1011_v2 }
 0x19d   : > { %v898_v18 = vshrl.u32 %v897_v60, 23  ;;  %v1020_v21 = vshll.u32 %v4388_v8, %v1011_v2  ;;  %v1023_v22 = vshll.u32 %v4386_v11, %v1011_v2  ;;  %v1026_v24 = vshll.u32 %v4395_v14, %v1011_v2 }
 0x19e   : > { %v1015_v19 = vshrl.u32 %v4382_v3, %v1012_v12  ;;  %v1018_v20 = vshrl.u32 %v4388_v8, %v1012_v12  ;;  %v1021_v62 = vshrl.u32 %v4386_v11, %v1012_v12  ;;  %v1024_v23 = vshrl.u32 %v4395_v14, %v1012_v12 }
 0x19f   : > { %v1027_v25 = vshrl.u32 %v4392_v17, %v1012_v12  ;;  %v851_v26 = vadd.s32 %v850_v15, %v846_v9  ;;  %vm1029_vm8 = vcmp.lt.s32.totalorder %v1010_v10, 1  ;;  %v1013_v29 = vshrl.u32 %v4384_v1, %v1012_v12 }
 0x1a0   : > { %v1016_v27 = vor.u32 %v1015_v19, %v1014_v57  ;;  %v1019_v28 = vor.u32 %v1018_v20, %v1017_v16  ;;  %v1022_v30 = vor.u32 %v1021_v62, %v1020_v21  ;;  %v1025_v31 = vor.u32 %v1024_v23, %v1023_v22 }
 0x1a1   : > { %v1028_v33 = vor.u32 %v1027_v25, %v1026_v24  ;;  %vm1031_vm9 = vcmp.lt.s32.totalorder %v1010_v10, 3  ;;  %vm1032_vm10 = vcmp.lt.s32.totalorder %v1010_v10, 4  ;;  %v2437_v35 = vadd.s32 4294967169, %v898_v18 }
 0x1a2   : > { %v1037_v34 = vsel %vm1029_vm8, %v1016_v27, %v1019_v28  ;;  %v1034_v40 = vsel %vm1032_vm10, %v1022_v30, 2102212464  ;;  %v1038_v43 = vsel %vm1032_vm10, %v1025_v31, 920167782  ;;  %v1041_v44 = vsel %vm1029_vm8, %v1019_v28, %v1022_v30 }
 0x1a3   : > { %v1042_v45 = vsel %vm1032_vm10, %v1028_v33, 1326507024  ;;  %v852_v46 = vadd.s32 536870912, %v851_v26  ;;  %vm1030_vm11 = vcmp.lt.s32.totalorder %v1010_v10, 2  ;;  %v1039_v50 = vsel %vm1031_vm9, %v1022_v30, %v1038_v43 }
 0x1a4   : > { %v1043_v52 = vsel %vm1031_vm9, %v1025_v31, %v1042_v45  ;;  %v3209_v54 = vsub.s32 0, %v3182_v61  ;;  %v691_v55 = vand.u32 2139095040, %v3189_v7  ;;  %v1040_v56 = vsel %vm1030_vm11, %v1037_v34, %v1039_v50 }
 0x1a5   : > { %v1044_v60 = vsel %vm1030_vm11, %v1041_v44, %v1043_v52  ;;  %v1033_v2 = vsel %vm1029_vm8, %v1013_v29, %v1016_v27  ;;  %v1035_v6 = vsel %vm1031_vm9, %v1019_v28, %v1034_v40  ;;  %v904_v16 = vadd.s32 1, %v2437_v35 }
 0x1a6   : > { %4435 = vst [vmem:[#allocation15_spill] sm:$0xff] %v3209_v54  ;;  %v3214_v9 = vmul.u32.u64.low %v1045_v13, %v1044_v60  ;;  %v3215_v12 = vmul.u32.u64.high %v1045_v13, %v1044_v60, %v3214_v9  ;;  %v3217_v15 = vmul.u32.u64.low %v1045_v13, %v1040_v56  ;;  %v3218_v57 = vmul.u32.u64.high %v1045_v13, %v1040_v56, %v3217_v15 }
 0x1a7   : > { %v3221_v18 = vshrl.u32 %v852_v46, 30  ;;  %v3224_v19 = vrot.slane %v635_v4, %v3209_v54  ;;  %v1036_v20 = vsel %vm1030_vm11, %v1033_v2, %v1035_v6  ;;  %vm905_vm12 = vcmp.gt.s32.totalorder %v904_v16, 0 }
 0x1a8   : > { %v692_v21 = vshrl.u32 %v691_v55, 23  ;;  %vm1054_vm13 = vc.u32 %v3215_v12, %v3217_v15  ;;  %v4378_v10 = vand.u32 2147483647, %v3144_v63  ;;  %v906_v22 = vsel %vm905_vm12, %v904_v16, 0 }
 0x1a9   : > { %v1055_v62 = vadd.s32 1, %v3218_v57  ;;  %v908_v23 = vand.u32 31, %v906_v22  ;;  %v854_v24 = vshll.u32 %v3221_v18, 30  ;;  %v1052_v25 = vmul.u32 %v1045_v13, %v1036_v20 }
 0x1aa   : > { %v643_v4 = vmul.f32 %v3224_v19, %v3114_v39  ;;  %v2429_v29 = vadd.s32 4294967169, %v692_v21  ;;  %v901_v31 = vand.u32 8388607, %v4378_v10  ;;  %v3243_v13 = vadd.f32 %v3138_v59, %v3106_v36 }
 0x1ab   : > { %v1056_v27 = vsel %vm1054_vm13, %v1055_v62, %v3218_v57  ;;  %v909_v28 = vsub.s32 32, %v908_v23  ;;  %v3245_v40 = vsub.s32 %v851_v26, %v854_v24  ;;  %v911_v43 = vshll.u32 %v4384_v1, %v908_v23 }
 0x1ac   : > { %v3234_v30 = vadd.s32 %v1056_v27, %v1052_v25  ;;  %4436 = vst [vmem:[#allocation16_spill] sm:$0xff] %v3243_v13  ;;  %v914_v44 = vshll.u32 %v4382_v3, %v908_v23  ;;  %v907_v50 = vshrl.u32 %v906_v22, 5  ;;  %v917_v52 = vshll.u32 %v4388_v8, %v908_v23 }
 0x1ad   : > { %v912_v33 = vshrl.u32 %v4382_v3, %v909_v28  ;;  %v915_v34 = vshrl.u32 %v4388_v8, %v909_v28  ;;  %v918_v35 = vshrl.u32 %v4386_v11, %v909_v28  ;;  %v921_v45 = vshrl.u32 %v4395_v14, %v909_v28 }
 0x1ae   : > { %v1058_v46 = vadd.s32 536870912, %v3234_v30  ;;  %v920_v55 = vshll.u32 %v4386_v11, %v908_v23  ;;  %v902_v56 = vor.u32 8388608, %v901_v31  ;;  %v923_v26 = vshll.u32 %v4395_v14, %v908_v23 }
 0x1af   : > { %v913_v60 = vor.u32 %v912_v33, %v911_v43  ;;  %v916_v2 = vor.u32 %v915_v34, %v914_v44  ;;  %v919_v59 = vor.u32 %v918_v35, %v917_v52  ;;  %v924_v9 = vshrl.u32 %v4392_v17, %v909_v28 }
 0x1b0   : > { %v922_v6 = vor.u32 %v921_v45, %v920_v55  ;;  %v651_v57 = vmul.f32 %v643_v4, %v3114_v39  ;;  %v857_v16 = vsub.s32 0, %v3245_v40  ;;  %v642_v20 = vmul.f32 %v3224_v19, %v3136_v58 }
 0x1b1   : > { %v3261_v21 = vmul.f32 %v3111_v38, %v3243_v13  ;;  %v698_v22 = vadd.s32 1, %v2429_v29  ;;  %v3263_v62 = vshrl.u32 %v1058_v46, 30  ;;  %v925_v24 = vor.u32 %v924_v9, %v923_v26 }
 0x1b2   : > { %vm926_vm14 = vcmp.lt.s32.totalorder %v907_v50, 1  ;;  %vm929_vm15 = vcmp.lt.s32.totalorder %v907_v50, 4  ;;  %v942_v25 = vshll.u32 %v902_v56, 8  ;;  %v3268_v27 = vadd.f32 %v3106_v36, %v3146_v0 }
 0x1b3   : > { %4437 = vst [vmem:[#allocation17_spill] sm:$0xff] %v3263_v62  ;;  %v934_v23 = vsel %vm926_vm14, %v913_v60, %v916_v2  ;;  %v931_v4 = vsel %vm929_vm15, %v919_v59, 2102212464  ;;  %v935_v31 = vsel %vm929_vm15, %v922_v6, 920167782  ;;  %v938_v33 = vsel %vm926_vm14, %v916_v2, %v919_v59 }
 0x1b4   : > { %4438 = vst [vmem:[#allocation18_spill] sm:$0xff] %v3268_v27  ;;  %v939_v34 = vsel %vm929_vm15, %v925_v24, 1326507024  ;;  %v2434_v35 = vmin.u32 %v857_v16, %v3245_v40  ;;  %v910_v29 = vshrl.u32 %v4384_v1, %v909_v28  ;;  %vm928_vm1 = vcmp.lt.s32.totalorder %v907_v50, 3 }
 0x1b5   : > { %v1206_v43 = vand.u32 2139095040, %v3261_v21  ;;  %v1060_v44 = vshll.u32 %v3263_v62, 30  ;;  %vm927_vm2 = vcmp.lt.s32.totalorder %v907_v50, 2  ;;  %v936_v45 = vsel %vm928_vm1, %v919_v59, %v935_v31 }
 0x1b6   : > { %v940_v46 = vsel %vm928_vm1, %v922_v6, %v939_v34  ;;  %v930_v0 = vsel %vm926_vm14, %v910_v29, %v913_v60  ;;  %v932_v52 = vsel %vm928_vm1, %v916_v2, %v931_v4  ;;  %v937_v55 = vsel %vm927_vm2, %v934_v23, %v936_v45 }
 0x1b7   : > { %v941_v56 = vsel %vm927_vm2, %v938_v33, %v940_v46  ;;  %v3279_v24 = vmul.u32.u64.low %v942_v25, %v937_v55  ;;  %v3280_v16 = vmul.u32.u64.high %v942_v25, %v937_v55, %v3279_v24  ;;  %v1207_v28 = vshrl.u32 %v1206_v43, 23 }
 0x1b8   : > { %v3276_v26 = vmul.u32.u64.low %v942_v25, %v941_v56  ;;  %v3277_v9 = vmul.u32.u64.high %v942_v25, %v941_v56, %v3276_v26  ;;  %v3285_v5 = vmul.f32 %v3111_v38, %v3268_v27  ;;  %v660_v10 = vmul.f32 1.442695, %v651_v57 }
 0x1b9   : > { %v650_v59 = vmul.f32 %v642_v20, %v3136_v58  ;;  %v933_v50 = vsel %vm927_vm2, %v930_v0, %v932_v52  ;;  %v4380_v60 = vand.u32 2147483647, %v3189_v7  ;;  %vm699_vm3 = vcmp.gt.s32.totalorder %v698_v22, 0 }
 0x1ba   : > { %v645_v2 = vmul.f32 %v3224_v19, %v3125_v48  ;;  %v644_v6 = vmul.f32 %v3224_v19, %v3132_v53  ;;  %v2449_v23 = vadd.s32 4294967169, %v1207_v28  ;;  %v859_v4 = vclz %v2434_v35 }
 0x1bb   : > { %v3294_v31 = vsub.s32 %v3234_v30, %v1060_v44  ;;  %vm951_vm4 = vc.u32 %v3277_v9, %v3279_v24  ;;  %v952_v57 = vadd.s32 1, %v3280_v16  ;;  %v949_v20 = vmul.u32 %v942_v25, %v933_v50 }
 0x1bc   : > { %v4379_v33 = vand.u32 2147483647, %v3261_v21  ;;  %v1213_v34 = vadd.s32 1, %v2449_v23  ;;  %v1103_v29 = vand.u32 2139095040, %v3285_v5  ;;  %2820 = vpow2.f32 %v660_v10 }
 0x1bd   : > { %v658_v43 = vmul.f32 1.442695, %v650_v59  ;;  %v953_v45 = vsel %vm951_vm4, %v952_v57, %v3280_v16  ;;  %v653_v35 = vmul.f32 %v645_v2, %v3125_v48  ;;  %v652_v30 = vmul.f32 %v644_v6, %v3132_v53 }
 0x1be   : > { %v954_v44 = vadd.s32 %v953_v45, %v949_v20  ;;  %v3306_v46 = vand.u32 8388607, %v4380_v60  ;;  %v2435_v0 = vadd.s32 4294967294, %v859_v4  ;;  %v700_v25 = vsel %vm699_vm3, %v698_v22, 0 }
 0x1bf   : > { %v1063_v52 = vsub.s32 0, %v3294_v31  ;;  %vm1214_vm5 = vcmp.gt.s32.totalorder %v1213_v34, 0  ;;  %v1210_v10 = vand.u32 8388607, %v4379_v33  ;;  %v1104_v26 = vshrl.u32 %v1103_v29, 23 }
 0x1c0   : > { %v955_v55 = vadd.s32 536870912, %v954_v44  ;;  %v1215_v56 = vsel %vm1214_vm5, %v1213_v34, 0  ;;  %2822 = vpow2.f32 %v658_v43  ;;  %v3312_v28 = vshrl.u32 %v700_v25, 5 }
 0x1c1   : > { %v1217_v16 = vand.u32 31, %v1215_v56  ;;  %v3314_v59 = vand.u32 31, %v700_v25  ;;  %v664_v50 = vmul.f32 1.442695, %v653_v35  ;;  %vm2436_vm6 = vcmp.lt.s32.totalorder %v2435_v0, 0 }
 0x1c2   : > { %v2442_v22 = vmin.u32 %v1063_v52, %v3294_v31  ;;  %v662_v6 = vmul.f32 1.442695, %v652_v30  ;;  %v3318_v4 = vshrl.u32 %v955_v55, 30  ;;  %v1211_v57 = vor.u32 8388608, %v1210_v10 }
 0x1c3   : > { %v1218_v23 = vsub.s32 32, %v1217_v16  ;;  %v1220_v20 = vshll.u32 %v4384_v1, %v1217_v16  ;;  %v2445_v34 = vadd.s32 4294967169, %v1104_v26  ;;  %v1223_v43 = vshll.u32 %v4382_v3, %v1217_v16 }
 0x1c4   : > { %4439 = vst [vmem:[#allocation19_spill] sm:$0xff] %v3318_v4  ;;  %v3325_v25 = vshrl.u32 %v1215_v56, 5  ;;  %v1226_v52 = vshll.u32 %v4388_v8, %v1217_v16  ;;  %v1229_v30 = vshll.u32 %v4386_v11, %v1217_v16  ;;  %v1232_v60 = vshll.u32 %v4395_v14, %v1217_v16 }
 0x1c5   : > { %v1221_v29 = vshrl.u32 %v4382_v3, %v1218_v23  ;;  %v1224_v45 = vshrl.u32 %v4388_v8, %v1218_v23  ;;  %v1227_v35 = vshrl.u32 %v4386_v11, %v1218_v23  ;;  %v1230_v55 = vshrl.u32 %v4395_v14, %v1218_v23 }
 0x1c6   : > { %v3330_v10 = vpop.eup %2820  ;;  %v1233_v42 = vshrl.u32 %v4392_v17, %v1218_v23  ;;  %2824 = vpow2.f32 %v664_v50  ;;  %v957_v2 = vshll.u32 %v3318_v4, 30  ;;  %v3336_v1 = vsel %vm2436_vm6, 0, %v2435_v0 }
 0x1c7   : > { %4440 = vst [vmem:[#allocation20_spill] sm:$0xff] %v3330_v10  ;;  %v1222_v33 = vor.u32 %v1221_v29, %v1220_v20  ;;  %v1225_v26 = vor.u32 %v1224_v45, %v1223_v43  ;;  %v1228_v3 = vor.u32 %v1227_v35, %v1226_v52  ;;  %v1231_v56 = vor.u32 %v1230_v55, %v1229_v30 }
 0x1c8   : > { %2826 = vpow2.f32 %v662_v6  ;;  %v1234_v11 = vor.u32 %v1233_v42, %v1232_v60  ;;  %v1110_v8 = vadd.s32 1, %v2445_v34  ;;  %v1065_v54 = vclz %v2442_v22 }
 0x1c9   : > { %vm1235_vm7 = vcmp.lt.s32.totalorder %v3325_v25, 1  ;;  %vm1238_vm8 = vcmp.lt.s32.totalorder %v3325_v25, 4  ;;  %v4394_v16 = vand.u32 2147483647, %v3285_v5  ;;  %vm1237_vm9 = vcmp.lt.s32.totalorder %v3325_v25, 3 }
 0x1ca   : > { %v3341_v20 = vpop.eup %2822  ;;  %v1243_v50 = vsel %vm1235_vm7, %v1222_v33, %v1225_v26  ;;  %v1244_v29 = vsel %vm1238_vm8, %v1231_v56, 920167782  ;;  %v1251_v0 = vshll.u32 %v1211_v57, 8  ;;  %v3346_v43 = vsub.s32 %v954_v44, %v957_v2 }
 0x1cb   : > { %4441 = vst [vmem:[#allocation21_spill] sm:$0xff] %v3341_v20  ;;  %vm1236_vm10 = vcmp.lt.s32.totalorder %v3325_v25, 2  ;;  %v1245_v42 = vsel %vm1237_vm9, %v1228_v3, %v1244_v29  ;;  %v1247_v60 = vsel %vm1235_vm7, %v1225_v26, %v1228_v3  ;;  %v867_v22 = vsub.s32 4294967266, %v3336_v1 }
 0x1cc   : > { %v1246_v6 = vsel %vm1236_vm10, %v1243_v50, %v1245_v42  ;;  %v1248_v34 = vsel %vm1238_vm8, %v1234_v11, 1326507024  ;;  %vm1111_vm11 = vcmp.gt.s32.totalorder %v1110_v8, 0  ;;  %v1240_v45 = vsel %vm1238_vm8, %v1228_v3, 2102212464 }
 0x1cd   : > { %v1249_v44 = vsel %vm1237_vm9, %v1231_v56, %v1248_v34  ;;  %v3358_v2 = vmul.u32.u64.low %v1251_v0, %v1246_v6  ;;  %v3359_v57 = vmul.u32.u64.high %v1251_v0, %v1246_v6, %v3358_v2  ;;  %v2443_v35 = vadd.s32 4294967294, %v1065_v54 }
 0x1ce   : > { %v4442_v52 = vmov 683565275   ;;  %v1250_v55 = vsel %vm1236_vm10, %v1247_v60, %v1249_v44  ;;  %v1112_v29 = vsel %vm1111_vm11, %v1110_v8, 0  ;;  %v960_v17 = vsub.s32 0, %v3346_v43 }
 0x1cf   : > { %v1219_v30 = vshrl.u32 %v4442_v52, %v1218_v23  ;;  %v3366_v50 = vmul.u32.u64.low %v1251_v0, %v1250_v55  ;;  %v3367_v11 = vmul.u32.u64.high %v1251_v0, %v1250_v55, %v3366_v50  ;;  %v1107_v3 = vand.u32 8388607, %v4394_v16 }
 0x1d0   : > { %v847_v56 = vadd.s32 %v3174_v49, %v3171_v47  ;;  %v1241_v23 = vsel %vm1237_vm9, %v1225_v26, %v1240_v45  ;;  %v1114_v42 = vand.u32 31, %v1112_v29  ;;  %v3377_v60 = vpop.eup %2824  ;;  %v3381_v8 = vmul.f32 %v3224_v19, %v3243_v13 }
 0x1d1   : > { %v1239_v54 = vsel %vm1235_vm7, %v1219_v30, %v1222_v33  ;;  %4443 = vst [vmem:[#allocation22_spill] sm:$0xff] %v3377_v60  ;;  %v1261_v6 = vadd.s32 1, %v3359_v57  ;;  %v3386_v34 = vadd.f32 %v3164_v32, %v3106_v36  ;;  %v3390_v47 = vadd.f32 %v3106_v36, %v3166_v37 }
 0x1d2   : > { %v3392_v49 = vpop.eup %2826  ;;  %v863_v33 = vsub.s32 32, %v3336_v1  ;;  %v868_v26 = vadd.s32 127, %v867_v22  ;;  %vm2444_vm12 = vcmp.lt.s32.totalorder %v2443_v35, 0  ;;  %v1115_v45 = vsub.s32 32, %v1114_v42 }
 0x1d3   : > { %4444 = vst [vmem:[#allocation23_spill] sm:$0xff] %v3392_v49  ;;  %v2438_v44 = vmin.u32 %v960_v17, %v3346_v43  ;;  %v1242_v30 = vsel %vm1236_vm10, %v1239_v54, %v1241_v23  ;;  %vm1260_vm13 = vc.u32 %v3367_v11, %v3358_v2  ;;  %v1108_v32 = vor.u32 8388608, %v1107_v3 }
 0x1d4   : > { %v1117_v55 = vshll.u32 %v4442_v52, %v1114_v42  ;;  %v4445_v36 = vmov 2475754826   ;;  %v4446_v16 = vmov 2131351028   ;;  %v1262_v22 = vsel %vm1260_vm13, %v1261_v6, %v3359_v57 }
 0x1d5   : > { %v1118_v37 = vshrl.u32 %v4445_v36, %v1115_v45  ;;  %v1120_v50 = vshll.u32 %v4445_v36, %v1114_v42  ;;  %v1121_v14 = vshrl.u32 %v4446_v16, %v1115_v45  ;;  %v1113_v61 = vshrl.u32 %v1112_v29, 5 }
 0x1d6   : > { %v1123_v17 = vshll.u32 %v4446_v16, %v1114_v42  ;;  %v4447_v48 = vmov 2102212464   ;;  %v4448_v3 = vmov 920167782   ;;  %v864_v58 = vshll.u32 %v3245_v40, %v3336_v1 }
 0x1d7   : > { %v1124_v25 = vshrl.u32 %v4447_v48, %v1115_v45  ;;  %v1119_v54 = vor.u32 %v1118_v37, %v1117_v55  ;;  %v1122_v23 = vor.u32 %v1121_v14, %v1120_v50  ;;  %v1126_v60 = vshll.u32 %v4447_v48, %v1114_v42 }
 0x1d8   : > { %v1127_v39 = vshrl.u32 %v4448_v3, %v1115_v45  ;;  %v865_v20 = vshrl.u32 %v847_v56, %v863_v33  ;;  %v1258_v53 = vmul.u32 %v1251_v0, %v1242_v30  ;;  %v869_v10 = vshll.u32 %v868_v26, 23 }
 0x1d9   : > { %v1125_v49 = vor.u32 %v1124_v25, %v1123_v17  ;;  %v1129_v57 = vshll.u32 %v4448_v3, %v1114_v42  ;;  %v4449_v29 = vmov 1326507024   ;;  %v3414_v7 = vsel %vm2444_vm12, 0, %v2443_v35 }
 0x1da   : > { %v1128_v62 = vor.u32 %v1127_v39, %v1126_v60  ;;  %v1130_v6 = vshrl.u32 %v4449_v29, %v1115_v45  ;;  %v962_v14 = vclz %v2438_v44  ;;  %v3416_v55 = vadd.s32 %v1262_v22, %v1258_v53 }
 0x1db   : > { %vm1132_vm14 = vcmp.lt.s32.totalorder %v1113_v61, 1  ;;  %vm1135_vm15 = vcmp.lt.s32.totalorder %v1113_v61, 4  ;;  %v1148_v1 = vshll.u32 %v1108_v32, 8  ;;  %v1116_v40 = vshrl.u32 %v4442_v52, %v1115_v45 }
 0x1dc   : > { %v1131_v37 = vor.u32 %v1130_v6, %v1129_v57  ;;  %v1140_v50 = vsel %vm1132_vm14, %v1119_v54, %v1122_v23  ;;  %vm1134_vm1 = vcmp.lt.s32.totalorder %v1113_v61, 3  ;;  %v1137_v0 = vsel %vm1135_vm15, %v1125_v49, 2102212464  ;;  %v1673_v57 = vld [vmem:[%s4369_s8 + $0x8] sm:$0xff] }
 0x1dd   : > { %v1141_v39 = vsel %vm1135_vm15, %v1128_v62, 920167782  ;;  %vm1133_vm2 = vcmp.lt.s32.totalorder %v1113_v61, 2  ;;  %v1144_v42 = vsel %vm1132_vm14, %v1122_v23, %v1125_v49  ;;  %v1264_v35 = vadd.s32 536870912, %v3416_v55 }
 0x1de   : > { %v1142_v56 = vsel %vm1134_vm1, %v1125_v49, %v1141_v39  ;;  %v1145_v60 = vsel %vm1135_vm15, %v1131_v37, 1326507024  ;;  %v1136_v33 = vsel %vm1132_vm14, %v1116_v40, %v1119_v54  ;;  %v3423_v26 = vmul.f32 %v3111_v38, %v3386_v34  ;;  %v1528_v49 = vld [vmem:[%s4367_s6] sm:$0xff] }
 0x1df   : > { %v1143_v53 = vsel %vm1133_vm2, %v1140_v50, %v1142_v56  ;;  %v1138_v44 = vsel %vm1134_vm1, %v1122_v23, %v1137_v0  ;;  %v1146_v30 = vsel %vm1134_vm1, %v1128_v62, %v1145_v60  ;;  %v866_v22 = vor.u32 %v865_v20, %v864_v58  ;;  %v1529_v23 = vld [vmem:[%s4367_s6 + $0x8] sm:$0xff]  ;;  %v1672_v62 = vld [vmem:[%s4369_s8] sm:$0xff] }
 0x1e0   : > { %4450 = vst [vmem:[#allocation24_spill] sm:$0xff] %v3423_v26  ;;  %v3425_v32 = vmul.u32.u64.low %v1148_v1, %v1143_v53  ;;  %v3426_v45 = vmul.u32.u64.high %v1148_v1, %v1143_v53, %v3425_v32  ;;  %v870_v17 = vor.u32 4788187, %v869_v10  ;;  %v646_v25 = vmul.f32 %v3224_v19, %v3268_v27 }
 0x1e1   : > { %v1147_v54 = vsel %vm1133_vm2, %v1144_v42, %v1146_v30  ;;  %v1073_v58 = vsub.s32 4294967266, %v3414_v7  ;;  %v655_v10 = vmul.f32 %v3381_v8, %v3243_v13  ;;  %v2439_v37 = vadd.s32 4294967294, %v962_v14 }
 0x1e2   : > { %v3447_v20 = vmul.u32.u64.low %v1148_v1, %v1147_v54  ;;  %v3448_v6 = vmul.u32.u64.high %v1148_v1, %v1147_v54, %v3447_v20  ;;  %v3450_v50 = vshrl.u32 %v1264_v35, 30  ;;  %v1139_v40 = vsel %vm1133_vm2, %v1136_v33, %v1138_v44  ;;  %v1531_v44 = vld [vmem:[%s4367_s6 + $0x18] sm:$0xff] }
 0x1e3   : > { %v1412_v0 = vand.u32 2139095040, %v3423_v26  ;;  %v1158_v39 = vadd.s32 1, %v3426_v45  ;;  %v3457_v56 = vmul.f32 %v3111_v38, %v3390_v47  ;;  %v2681_v42 = vpack.c.bf16 %v1529_v23, %v1528_v49  ;;  %v1530_v38 = vld [vmem:[%s4367_s6 + $0x10] sm:$0xff] }
 0x1e4   : > { %4451 = vst [vmem:[#allocation25_spill] sm:$0xff] %v3450_v50  ;;  %v2697_v60 = vpack.c.bf16 %v1673_v57, %v1672_v62  ;;  %v871_v53 = vand.u32 2147483647, %v870_v17  ;;  %v873_v8 = vcvt.s32.f32 %v866_v22  ;;  %v1053_v30 = vadd.s32 %v3217_v15, %v3215_v12 }
 0x1e5   : > { %4452 = vst [vmem:[#allocation26_spill] sm:$0xff] %v3457_v56  ;;  %v1413_v14 = vshrl.u32 %v1412_v0, 23  ;;  %v1069_v35 = vsub.s32 32, %v3414_v7  ;;  %v668_v61 = vmul.f32 1.442695, %v655_v10  ;;  %v1155_v33 = vmul.u32 %v1148_v1, %v1139_v40  ;;  %2682 = vmatprep.subr.bf16.mxu1 %v2681_v42  ;;  %v1674_v40 = vld [vmem:[%s4369_s8 + $0x10] sm:$0xff] }
 0x1e6   : > { %vm1157_vm3 = vc.u32 %v3448_v6, %v3425_v32  ;;  %2698 = vmatprep.subr.bf16.mxu0 %v2697_v60  ;;  %v1074_v49 = vadd.s32 127, %v1073_v58  ;;  %v1266_v12 = vshll.u32 %v3450_v50, 30  ;;  %2684 = vmatpush3.bf16.msra.mxu1 %v2681_v42  ;;  %vm2440_vm4 = vcmp.lt.s32.totalorder %v2439_v37, 0 }
 0x1e7   : > { %v1159_v15 = vsel %vm1157_vm3, %v1158_v39, %v3426_v45  ;;  %v2457_v22 = vadd.s32 4294967169, %v1413_v14  ;;  %2700 = vmatpush3.bf16.msra.mxu0 %v2697_v60  ;;  %v4407_v17 = vand.u32 2147483647, %v3423_v26  ;;  %v1309_v54 = vand.u32 2139095040, %v3457_v56 }
 0x1e8   : > { %v3472_v1 = vadd.s32 %v1159_v15, %v1155_v33  ;;  %v3476_v23 = vmul.f32 %v873_v8, %v871_v53  ;;  %v654_v62 = vmul.f32 %v646_v25, %v3268_v27  ;;  %v2685_v58 = vpack.c.bf16 %v1531_v44, %v1530_v38  ;;  %v1675_v25 = vld [vmem:[%s4369_s8 + $0x18] sm:$0xff] }
 0x1e9   : > { %v1419_v57 = vadd.s32 1, %v2457_v22  ;;  %v3480_v10 = vsub.s32 32, %v3314_v59  ;;  %v1070_v45 = vshll.u32 %v3294_v31, %v3414_v7  ;;  %v1071_v20 = vshrl.u32 %v1053_v30, %v1069_v35  ;;  %v1532_v7 = vld [vmem:[%s4367_s6 + $0x20] sm:$0xff]  ;;  %v1533_v31 = vld [vmem:[%s4367_s6 + $0x28] sm:$0xff] }
 0x1ea   : > { %2828 = vpow2.f32 %v668_v61  ;;  %v1075_v0 = vshll.u32 %v1074_v49, 23  ;;  %v3487_v39 = vsel %vm2440_vm4, 0, %v2439_v37  ;;  %v3490_v42 = vsub.s32 %v3416_v55, %v1266_v12  ;;  %2686 = vmatprep.subr.bf16.mxu1 %v2685_v58 }
 0x1eb   : > { %vm1420_vm5 = vcmp.gt.s32.totalorder %v1419_v57, 0  ;;  %v1161_v37 = vadd.s32 536870912, %v3472_v1  ;;  %v1416_v55 = vand.u32 8388607, %v4407_v17  ;;  %v1310_v53 = vshrl.u32 %v1309_v54, 23  ;;  %2688 = vmatpush3.bf16.msra.mxu1 %v2685_v58 }
 0x1ec   : > { %v1421_v60 = vsel %vm1420_vm5, %v1419_v57, 0  ;;  %v950_v30 = vadd.s32 %v3279_v24, %v3277_v9  ;;  %v3507_v14 = vmul.f32 1.442695, %v654_v62  ;;  %v3509_v61 = vor.u32 %v1071_v20, %v1070_v45 }
 0x1ed   : > { %v1423_v35 = vand.u32 31, %v1421_v60  ;;  %v3513_v33 = vmul.f32 %v3224_v19, %v3386_v34  ;;  %v2701_v38 = vpack.c.bf16 %v1675_v25, %v1674_v40  ;;  %v2689_v44 = vpack.c.bf16 %v1533_v31, %v1532_v7 }
 0x1ee   : > { %v3515_v49 = vor.u32 4788187, %v1075_v0  ;;  %v966_v12 = vsub.s32 32, %v3487_v39  ;;  %v1269_v15 = vsub.s32 0, %v3490_v42  ;;  %v3519_v54 = vshrl.u32 %v1161_v37, 30 }
 0x1ef   : > { %v1424_v22 = vsub.s32 32, %v1423_v35  ;;  %v1417_v9 = vor.u32 8388608, %v1416_v55  ;;  %v1426_v24 = vshll.u32 %v4442_v52, %v1423_v35  ;;  %v2453_v62 = vadd.s32 4294967169, %v1310_v53  ;;  %2702 = vmatprep.subr.bf16.mxu0 %v2701_v38  ;;  %2690 = vmatprep.subr.bf16.mxu1 %v2689_v44 }
 0x1f0   : > { %4453 = vst [vmem:[#allocation27_spill] sm:$0xff] %v3519_v54  ;;  %v1422_v57 = vshrl.u32 %v1421_v60, 5  ;;  %v1429_v45 = vshll.u32 %v4445_v36, %v1423_v35  ;;  %v1432_v20 = vshll.u32 %v4446_v16, %v1423_v35  ;;  %2704 = vmatpush3.bf16.msra.mxu0 %v2701_v38  ;;  %v1435_v25 = vshll.u32 %v4447_v48, %v1423_v35 }
 0x1f1   : > { %v1427_v58 = vshrl.u32 %v4445_v36, %v1424_v22  ;;  %v1430_v40 = vshrl.u32 %v4446_v16, %v1424_v22  ;;  %v1433_v0 = vshrl.u32 %v4447_v48, %v1424_v22  ;;  %v1436_v7 = vshrl.u32 %v4448_v3, %v1424_v22  ;;  %2692 = vmatpush3.bf16.msra.mxu1 %v2689_v44 }
 0x1f2   : > { %v970_v31 = vsub.s32 4294967266, %v3487_v39  ;;  %v1438_v55 = vshll.u32 %v4448_v3, %v1423_v35  ;;  %v1439_v60 = vshrl.u32 %v4449_v29, %v1424_v22  ;;  %v1163_v38 = vshll.u32 %v3519_v54, 30 }
 0x1f3   : > { %v1428_v37 = vor.u32 %v1427_v58, %v1426_v24  ;;  %v1431_v17 = vor.u32 %v1430_v40, %v1429_v45  ;;  %v1434_v8 = vor.u32 %v1433_v0, %v1432_v20  ;;  %v1437_v13 = vor.u32 %v1436_v7, %v1435_v25 }
 0x1f4   : > { %v3532_v53 = vpop.eup %2828  ;;  %v2450_v27 = vmin.u32 %v1269_v15, %v3490_v42  ;;  %v1440_v50 = vor.u32 %v1439_v60, %v1438_v55  ;;  %v1457_v26 = vshll.u32 %v1417_v9, 8  ;;  %v4418_v44 = vand.u32 2147483647, %v3457_v56 }
 0x1f5   : > { %4454 = vst [vmem:[#allocation28_spill] sm:$0xff] %v3532_v53  ;;  %v1425_v4 = vshrl.u32 %v4442_v52, %v1424_v22  ;;  %vm1441_vm6 = vcmp.lt.s32.totalorder %v1422_v57, 1  ;;  %vm1444_vm7 = vcmp.lt.s32.totalorder %v1422_v57, 4  ;;  %v1316_v35 = vadd.s32 1, %v2453_v62 }
 0x1f6   : > { %vm1443_vm8 = vcmp.lt.s32.totalorder %v1422_v57, 3  ;;  %v1446_v24 = vsel %vm1444_vm7, %v1434_v8, 2102212464  ;;  %v1449_v58 = vsel %vm1441_vm6, %v1428_v37, %v1431_v17  ;;  %v1450_v53 = vsel %vm1444_vm7, %v1437_v13, 920167782 }
 0x1f7   : > { %v3539_v54 = vsub.s32 %v3472_v1, %v1163_v38  ;;  %vm1442_vm9 = vcmp.lt.s32.totalorder %v1422_v57, 2  ;;  %v1451_v45 = vsel %vm1443_vm8, %v1434_v8, %v1450_v53  ;;  %v1453_v20 = vsel %vm1441_vm6, %v1431_v17, %v1434_v8  ;;  %v1676_v8 = vld [vmem:[%s4369_s8 + $0x20] sm:$0xff] }
 0x1f8   : > { %v968_v15 = vshrl.u32 %v950_v30, %v966_v12  ;;  %v1445_v40 = vsel %vm1441_vm6, %v1425_v4, %v1428_v37  ;;  %v1452_v9 = vsel %vm1442_vm9, %v1449_v58, %v1451_v45  ;;  %v1454_v0 = vsel %vm1444_vm7, %v1440_v50, 1326507024  ;;  %v1677_v4 = vld [vmem:[%s4369_s8 + $0x28] sm:$0xff] }
 0x1f9   : > { %v1447_v25 = vsel %vm1443_vm8, %v1431_v17, %v1446_v24  ;;  %v1455_v22 = vsel %vm1443_vm8, %v1437_v13, %v1454_v0  ;;  %v3542_v7 = vmul.u32.u64.low %v1457_v26, %v1452_v9  ;;  %v3543_v55 = vmul.u32.u64.high %v1457_v26, %v1452_v9, %v3542_v7 }
 0x1fa   : > { %v3546_v62 = vadd.s32 127, %v970_v31  ;;  %v1271_v60 = vclz %v2450_v27  ;;  %v1456_v1 = vsel %vm1442_vm9, %v1453_v20, %v1455_v22  ;;  %vm1317_vm10 = vcmp.gt.s32.totalorder %v1316_v35, 0 }
 0x1fb   : > { %v967_v13 = vshll.u32 %v3346_v43, %v3487_v39  ;;  %v1166_v50 = vsub.s32 0, %v3539_v54  ;;  %v1313_v17 = vand.u32 8388607, %v4418_v44  ;;  %v1318_v27 = vsel %vm1317_vm10, %v1316_v35, 0 }
 0x1fc   : > { %v1448_v30 = vsel %vm1442_vm9, %v1445_v40, %v1447_v25  ;;  %v3561_v12 = vmul.u32.u64.low %v1457_v26, %v1456_v1  ;;  %v3562_v31 = vmul.u32.u64.high %v1457_v26, %v1456_v1, %v3561_v12  ;;  %v1320_v37 = vand.u32 31, %v1318_v27 }
 0x1fd   : > { %v1467_v24 = vadd.s32 1, %v3543_v55  ;;  %v2705_v58 = vpack.c.bf16 %v1677_v4, %v1676_v8  ;;  %v3567_v43 = vor.u32 %v968_v15, %v967_v13  ;;  %v972_v39 = vshll.u32 %v3546_v62, 23 }
 0x1fe   : > { %v3570_v45 = vadd.s32 4294967294, %v1271_v60  ;;  %v1321_v35 = vsub.s32 32, %v1320_v37  ;;  %v2446_v57 = vmin.u32 %v1166_v50, %v3539_v54  ;;  %v1464_v20 = vmul.u32 %v1457_v26, %v1448_v30 }
 0x1ff   : > { %v1314_v40 = vor.u32 8388608, %v1313_v17  ;;  %v1319_v9 = vshrl.u32 %v1318_v27, 5  ;;  %2706 = vmatprep.subr.bf16.mxu0 %v2705_v58  ;;  %vm1466_vm11 = vc.u32 %v3562_v31, %v3542_v7  ;;  %v1323_v0 = vshll.u32 %v4442_v52, %v1320_v37 }
 0x200   : > { %v1324_v25 = vshrl.u32 %v4445_v36, %v1321_v35  ;;  %v1326_v15 = vshll.u32 %v4445_v36, %v1320_v37  ;;  %2708 = vmatpush3.bf16.msra.mxu0 %v2705_v58  ;;  %v1468_v22 = vsel %vm1466_vm11, %v1467_v24, %v3543_v55  ;;  %v1327_v62 = vshrl.u32 %v4446_v16, %v1321_v35 }
 0x201   : > { %v1329_v60 = vshll.u32 %v4446_v16, %v1320_v37  ;;  %v1332_v26 = vshll.u32 %v4447_v48, %v1320_v37  ;;  %v1469_v1 = vadd.s32 %v1468_v22, %v1464_v20  ;;  %v1330_v4 = vshrl.u32 %v4447_v48, %v1321_v35 }
 0x202   : > { %v1325_v8 = vor.u32 %v1324_v25, %v1323_v0  ;;  %v1333_v13 = vshrl.u32 %v4448_v3, %v1321_v35  ;;  %v1168_v50 = vclz %v2446_v57  ;;  %v1328_v17 = vor.u32 %v1327_v62, %v1326_v15 }
 0x203   : > { %v1335_v27 = vshll.u32 %v4448_v3, %v1320_v37  ;;  %v1336_v30 = vshrl.u32 %v4449_v29, %v1321_v35  ;;  %v1470_v12 = vadd.s32 536870912, %v1469_v1  ;;  %v1322_v55 = vshrl.u32 %v4442_v52, %v1321_v35  ;;  %v1534_v35 = vld [vmem:[%s4367_s6 + $0x30] sm:$0xff] }
 0x204   : > { %v1331_v24 = vor.u32 %v1330_v4, %v1329_v60  ;;  %v1334_v58 = vor.u32 %v1333_v13, %v1332_v26  ;;  %vm1338_vm12 = vcmp.lt.s32.totalorder %v1319_v9, 1  ;;  %vm1340_vm13 = vcmp.lt.s32.totalorder %v1319_v9, 3  ;;  %v1535_v60 = vld [vmem:[%s4367_s6 + $0x38] sm:$0xff] }
 0x205   : > { %v1337_v44 = vor.u32 %v1336_v30, %v1335_v27  ;;  %vm1341_vm14 = vcmp.lt.s32.totalorder %v1319_v9, 4  ;;  %v3587_v20 = vshrl.u32 %v1470_v12, 30  ;;  %v1342_v0 = vsel %vm1338_vm12, %v1322_v55, %v1325_v8 }
 0x206   : > { %v1343_v25 = vsel %vm1341_vm14, %v1331_v24, 2102212464  ;;  %v1346_v22 = vsel %vm1338_vm12, %v1325_v8, %v1328_v17  ;;  %v1347_v15 = vsel %vm1341_vm14, %v1334_v58, 920167782  ;;  %v1350_v37 = vsel %vm1338_vm12, %v1328_v17, %v1331_v24  ;;  %v1678_v8 = vld [vmem:[%s4369_s8 + $0x30] sm:$0xff] }
 0x207   : > { %4455 = vst [vmem:[#allocation29_spill] sm:$0xff] %v3587_v20  ;;  %v1344_v57 = vsel %vm1340_vm13, %v1328_v17, %v1343_v25  ;;  %v1354_v62 = vshll.u32 %v1314_v40, 8  ;;  %v1472_v26 = vshll.u32 %v3587_v20, 30  ;;  %vm1339_vm15 = vcmp.lt.s32.totalorder %v1319_v9, 2  ;;  %v1679_v40 = vld [vmem:[%s4369_s8 + $0x38] sm:$0xff] }
 0x208   : > { %v1348_v4 = vsel %vm1340_vm13, %v1331_v24, %v1347_v15  ;;  %v1351_v13 = vsel %vm1341_vm14, %v1337_v44, 1326507024  ;;  %v2447_v17 = vadd.s32 4294967294, %v1168_v50  ;;  %v1345_v27 = vsel %vm1339_vm15, %v1342_v0, %v1344_v57 }
 0x209   : > { %v1349_v30 = vsel %vm1339_vm15, %v1346_v22, %v1348_v4  ;;  %v1352_v12 = vsel %vm1340_vm13, %v1334_v58, %v1351_v13  ;;  %v3605_v55 = vsub.s32 %v1469_v1, %v1472_v26  ;;  %v2693_v15 = vpack.c.bf16 %v1535_v60, %v1534_v35 }
 0x20a   : > { %v1353_v25 = vsel %vm1339_vm15, %v1350_v37, %v1352_v12  ;;  %v3607_v38 = vmul.u32.u64.low %v1354_v62, %v1349_v30  ;;  %v3608_v53 = vmul.u32.u64.high %v1354_v62, %v1349_v30, %v3607_v38  ;;  %v2709_v20 = vpack.c.bf16 %v1679_v40, %v1678_v8 }
 0x20b   : > { %v3611_v44 = vmul.u32.u64.low %v1354_v62, %v1353_v25  ;;  %v3612_v24 = vmul.u32.u64.high %v1354_v62, %v1353_v25, %v3611_v44  ;;  %v3614_v56 = vor.u32 4788187, %v972_v39  ;;  %vm2452_vm1 = vcmp.lt.s32.totalorder %v3570_v45, 0  ;;  %2694 = vmatprep.subr.bf16.mxu1 %v2693_v15 }
 0x20c   : > { %v1475_v50 = vsub.s32 0, %v3605_v55  ;;  %v706_v9 = vshrl.u32 %v4445_v36, %v3480_v10  ;;  %vm2448_vm2 = vcmp.lt.s32.totalorder %v2447_v17, 0  ;;  %2710 = vmatprep.subr.bf16.mxu0 %v2709_v20  ;;  %v705_v1 = vshll.u32 %v4442_v52, %v3314_v59  ;;  %2696 = vmatpush3.bf16.msra.mxu1 %v2693_v15 }
 0x20d   : > { %v708_v58 = vshll.u32 %v4445_v36, %v3314_v59  ;;  %v709_v39 = vshrl.u32 %v4446_v16, %v3480_v10  ;;  %v1361_v22 = vmul.u32 %v1354_v62, %v1345_v27  ;;  %v1364_v57 = vadd.s32 1, %v3608_v53  ;;  %2712 = vmatpush3.bf16.msra.mxu0 %v2709_v20 }
 0x20e   : > { %v2458_v0 = vmin.u32 %v1475_v50, %v3605_v55  ;;  %v712_v37 = vshrl.u32 %v4447_v48, %v3480_v10  ;;  %vm1363_vm3 = vc.u32 %v3612_v24, %v3607_v38  ;;  %v707_v35 = vor.u32 %v706_v9, %v705_v1 }
 0x20f   : > { %v710_v60 = vor.u32 %v709_v39, %v708_v58  ;;  %v711_v36 = vshll.u32 %v4446_v16, %v3314_v59  ;;  %v1365_v4 = vsel %vm1363_vm3, %v1364_v57, %v3608_v53  ;;  %v714_v62 = vshll.u32 %v4447_v48, %v3314_v59 }
 0x210   : > { %v1477_v26 = vclz %v2458_v0  ;;  %v715_v20 = vshrl.u32 %v4448_v3, %v3480_v10  ;;  %v1366_v13 = vadd.s32 %v1365_v4, %v1361_v22  ;;  %v717_v40 = vshll.u32 %v4448_v3, %v3314_v59 }
 0x211   : > { %v713_v8 = vor.u32 %v712_v37, %v711_v36  ;;  %v718_v27 = vshrl.u32 %v4449_v29, %v3480_v10  ;;  %v974_v30 = vand.u32 2147483647, %v3614_v56  ;;  %v3647_v16 = vsel %vm2452_vm1, 0, %v3570_v45 }
 0x212   : > { %v2459_v53 = vadd.s32 4294967294, %v1477_v26  ;;  %v716_v48 = vor.u32 %v715_v20, %v714_v62  ;;  %vm793_vm4 = vcmp.lt.s32.totalorder %v3118_v41, 0  ;;  %v1367_v12 = vadd.s32 536870912, %v1366_v13 }
 0x213   : > { %v719_v25 = vor.u32 %v718_v27, %v717_v40  ;;  %vm720_vm5 = vcmp.lt.s32.totalorder %v3312_v28, 1  ;;  %vm723_vm6 = vcmp.lt.s32.totalorder %v3312_v28, 4  ;;  %v3653_v59 = vsel %vm2448_vm2, 0, %v2447_v17 }
 0x214   : > { %vm722_vm7 = vcmp.lt.s32.totalorder %v3312_v28, 3  ;;  %v728_v3 = vsel %vm720_vm5, %v707_v35, %v710_v60  ;;  %v729_v29 = vsel %vm723_vm6, %v716_v48, 920167782  ;;  %v3658_v56 = vshrl.u32 %v1367_v12, 30 }
 0x215   : > { %vm721_vm8 = vcmp.lt.s32.totalorder %v3312_v28, 2  ;;  %v725_v45 = vsel %vm723_vm6, %v713_v8, 2102212464  ;;  %v730_v44 = vsel %vm722_vm7, %v713_v8, %v729_v29  ;;  %v1279_v15 = vsub.s32 4294967266, %v3647_v16 }
 0x216   : > { %vm2460_vm9 = vcmp.lt.s32.totalorder %v2459_v53, 0  ;;  %v704_v17 = vshrl.u32 %v4442_v52, %v3480_v10  ;;  %v731_v50 = vsel %vm721_vm8, %v728_v3, %v730_v44  ;;  %v1369_v9 = vshll.u32 %v3658_v56, 30 }
 0x217   : > { %v732_v1 = vsel %vm720_vm5, %v710_v60, %v713_v8  ;;  %v733_v58 = vsel %vm723_vm6, %v719_v25, 1326507024  ;;  %v4456_v39 = vor.u32 8388608, %v3306_v46  ;;  %v1176_v22 = vsub.s32 4294967266, %v3653_v59 }
 0x218   : > { %v724_v57 = vsel %vm720_vm5, %v704_v17, %v707_v35  ;;  %v726_v52 = vsel %vm722_vm7, %v710_v60, %v725_v45  ;;  %v734_v10 = vsel %vm722_vm7, %v716_v48, %v733_v58  ;;  %v3680_v37 = vsub.s32 %v1366_v13, %v1369_v9 }
 0x219   : > { %v736_v0 = vshll.u32 %v4456_v39, 8  ;;  %v735_v36 = vsel %vm721_vm8, %v732_v1, %v734_v10  ;;  %v4457_v46 = vand.u32 2147483647, %v3515_v49  ;;  %v4458_v62 = vcvt.s32.f32 %v3509_v61 }
 0x21a   : > { %v3694_v20 = vsel %vm2460_vm9, 0, %v2459_v53  ;;  %v976_v13 = vcvt.s32.f32 %v3567_v43  ;;  %v1280_v40 = vadd.s32 127, %v1279_v15  ;;  %v1372_v27 = vsub.s32 0, %v3680_v37 }
 0x21b   : > { %v3684_v26 = vmul.u32.u64.low %v736_v0, %v731_v50  ;;  %v3685_v4 = vmul.u32.u64.high %v736_v0, %v731_v50, %v3684_v26  ;;  %v3692_v35 = vmul.f32 %v4458_v62, %v4457_v46  ;;  %v727_v48 = vsel %vm721_vm8, %v724_v57, %v726_v52 }
 0x21c   : > { %v3696_v60 = vmul.u32.u64.low %v736_v0, %v735_v36  ;;  %v3697_v8 = vmul.u32.u64.high %v736_v0, %v735_v36, %v3696_v60  ;;  %v4459_v49 = vxor.u32 2147483648, %v3476_v23  ;;  %2830 = vpow2.f32 %v3507_v14 }
 0x21d   : > { %v1177_v53 = vadd.s32 127, %v1176_v22  ;;  %v657_v12 = vmul.f32 %v3513_v33, %v3386_v34  ;;  %v977_v43 = vmul.f32 %v976_v13, %v974_v30  ;;  %v1485_v25 = vsub.s32 4294967266, %v3694_v20 }
 0x21e   : > { %v3708_v61 = vsel %vm793_vm4, %v4459_v49, %v3476_v23  ;;  %v2454_v3 = vmin.u32 %v1372_v27, %v3680_v37  ;;  %v746_v28 = vadd.s32 1, %v3685_v4  ;;  %v1275_v29 = vsub.s32 32, %v3647_v16 }
 0x21f   : > { %v1172_v45 = vsub.s32 32, %v3653_v59  ;;  %v743_v44 = vmul.u32 %v736_v0, %v727_v48  ;;  %vm745_vm10 = vc.u32 %v3697_v8, %v3684_v26  ;;  %v1081_v23 = vxor.u32 2147483648, %v3692_v35 }
 0x220   : > { %v1281_v14 = vshll.u32 %v1280_v40, 23  ;;  %v1374_v15 = vclz %v2454_v3  ;;  %v747_v33 = vsel %vm745_vm10, %v746_v28, %v3685_v4  ;;  %v1259_v30 = vadd.s32 %v3358_v2, %v3367_v11 }
 0x221   : > { %v1156_v17 = vadd.s32 %v3425_v32, %v3448_v6  ;;  %v1178_v50 = vshll.u32 %v1177_v53, 23  ;;  %v748_v9 = vadd.s32 %v747_v33, %v743_v44  ;;  %v978_v1 = vxor.u32 2147483648, %v977_v43 }
 0x222   : > { %v3726_v58 = vmul.f32 1.442695, %v657_v12  ;;  %v1486_v39 = vadd.s32 127, %v1485_v25  ;;  %v2455_v0 = vadd.s32 4294967294, %v1374_v15  ;;  %vm896_vm11 = vcmp.lt.s32.totalorder %v3144_v63, 0 }
 0x223   : > { %v1277_v22 = vshrl.u32 %v1259_v30, %v1275_v29  ;;  %v1174_v57 = vshrl.u32 %v1156_v17, %v1172_v45  ;;  %v648_v52 = vmul.f32 %v3224_v19, %v3390_v47  ;;  %v749_v10 = vadd.s32 536870912, %v748_v9 }
 0x224   : > { %v1276_v2 = vshll.u32 %v3490_v42, %v3647_v16  ;;  %v1282_v11 = vor.u32 4788187, %v1281_v14  ;;  %v1481_v32 = vsub.s32 32, %v3694_v20  ;;  %vm2456_vm12 = vcmp.lt.s32.totalorder %v2455_v0, 0 }
 0x225   : > { %v1173_v6 = vshll.u32 %v3539_v54, %v3653_v59  ;;  %v1179_v36 = vor.u32 4788187, %v1178_v50  ;;  %v1377_v4 = vsel %vm2456_vm12, 0, %v2455_v0  ;;  %v3736_v46 = vshrl.u32 %v749_v10, 30 }
 0x226   : > { %v1465_v62 = vadd.s32 %v3542_v7, %v3562_v31  ;;  %v1487_v60 = vshll.u32 %v1486_v39, 23  ;;  %v1378_v19 = vsub.s32 32, %v1377_v4  ;;  %v1382_v13 = vsub.s32 4294967266, %v1377_v4  ;;  %v3740_v40 = vpop.eup %2830 }
 0x227   : > { %vm999_vm13 = vcmp.lt.s32.totalorder %v3129_v51, 0  ;;  %v1278_v42 = vor.u32 %v1277_v22, %v1276_v2  ;;  %v1175_v16 = vor.u32 %v1174_v57, %v1173_v6  ;;  %v656_v27 = vmul.f32 %v648_v52, %v3390_v47  ;;  %v4466_v57 = vld [vmem:[#allocation19_spill] sm:$0xff] }
 0x228   : > { %v751_v54 = vshll.u32 %v3736_v46, 30  ;;  %v1283_v59 = vand.u32 2147483647, %v1282_v11  ;;  %v1483_v48 = vshrl.u32 %v1465_v62, %v1481_v32  ;;  %v1362_v49 = vadd.s32 %v3607_v38, %v3612_v24 }
 0x229   : > { %v1383_v53 = vadd.s32 127, %v1382_v13  ;;  %v1180_v7 = vand.u32 2147483647, %v1179_v36  ;;  %v1482_v31 = vshll.u32 %v3605_v55, %v3694_v20  ;;  %v4460_v25 = vand.u32 2147483647, %v3118_v41 }
 0x22a   : > { %v3749_v12 = vsub.s32 %v748_v9, %v751_v54  ;;  %v1488_v28 = vor.u32 4788187, %v1487_v60  ;;  %v1380_v29 = vshrl.u32 %v1362_v49, %v1378_v19  ;;  %v877_v44 = vsub.s32 4, %v3221_v18  ;;  %v4468_v19 = vld [vmem:[#allocation14_spill] sm:$0xff] }
 0x22b   : > { %vm3753_vm14 = vcmp.le.f32.partialorder %v4460_v25, 0.7853982  ;;  %v1384_v45 = vshll.u32 %v1383_v53, 23  ;;  %v1285_v14 = vcvt.s32.f32 %v1278_v42  ;;  %v1182_v38 = vcvt.s32.f32 %v1175_v16 }
 0x22c   : > { %v754_v24 = vsub.s32 0, %v3749_v12  ;;  %v879_v55 = vsel %vm3753_vm14, %v3118_v41, %v3708_v61  ;;  %v979_v20 = vsel %vm896_vm11, %v978_v1, %v977_v43  ;;  %vm1102_vm15 = vcmp.lt.s32.totalorder %v3285_v5, 0 }
 0x22d   : > { %v1484_v15 = vor.u32 %v1483_v48, %v1482_v31  ;;  %v1379_v33 = vshll.u32 %v3680_v37, %v1377_v4  ;;  %v1385_v30 = vor.u32 4788187, %v1384_v45  ;;  %v1286_v17 = vmul.f32 %v1285_v14, %v1283_v59  ;;  %v4467_v4 = vld [vmem:[#allocation24_spill] sm:$0xff] }
 0x22e   : > { %v1183_v50 = vmul.f32 %v1182_v38, %v1180_v7  ;;  %v670_v9 = vmul.f32 1.442695, %v656_v27  ;;  %v2430_v39 = vmin.u32 %v754_v24, %v3749_v12  ;;  %v1489_v0 = vand.u32 2147483647, %v1488_v28 }
 0x22f   : > { %v1381_v22 = vor.u32 %v1380_v29, %v1379_v33  ;;  %v878_v61 = vsel %vm793_vm4, %v877_v44, %v3221_v18  ;;  %2832 = vcosq.f32 %v879_v55  ;;  %vm1205_vm1 = vcmp.lt.s32.totalorder %v3261_v21, 0 }
 0x230   : > { %v756_v43 = vclz %v2430_v39  ;;  %2834 = vsinq.f32 %v879_v55  ;;  %v4463_v1 = vand.u32 2147483647, %v3144_v63  ;;  %v980_v52 = vsub.s32 4, %v4466_v57 }
 0x231   : > { %v1082_v10 = vsel %vm999_vm13, %v1081_v23, %v3692_v35  ;;  %v1491_v18 = vcvt.s32.f32 %v1484_v15  ;;  %v1386_v2 = vand.u32 2147483647, %v1385_v30  ;;  %v1184_v32 = vxor.u32 2147483648, %v1183_v50  ;;  %v4469_v23 = vld [vmem:[#allocation26_spill] sm:$0xff] }
 0x232   : > { %vm3774_vm2 = vcmp.le.f32.partialorder %v4463_v1, 0.7853982  ;;  %2836 = vpow2.f32 %v3726_v58  ;;  %v2431_v6 = vadd.s32 4294967294, %v756_v43  ;;  %v880_v36 = vsel %vm3753_vm14, 0, %v878_v61 }
 0x233   : > { %v982_v11 = vsel %vm3774_vm2, %v3144_v63, %v979_v20  ;;  %vm1411_vm3 = vcmp.lt.s32.totalorder %v4467_v4, 0  ;;  %v1492_v62 = vmul.f32 %v1491_v18, %v1489_v0  ;;  %2838 = vpow2.f32 %v670_v9 }
 0x234   : > { %v1388_v60 = vcvt.s32.f32 %v1381_v22  ;;  %vm690_vm4 = vcmp.lt.s32.totalorder %v4468_v19, 0  ;;  %v1287_v35 = vxor.u32 2147483648, %v1286_v17  ;;  %vm1308_vm5 = vcmp.lt.s32.totalorder %v4469_v23, 0 }
 0x235   : > { %vm2432_vm6 = vcmp.lt.s32.totalorder %v2431_v6, 0  ;;  %v981_v13 = vsel %vm896_vm11, %v980_v52, %v4466_v57  ;;  %2840 = vcosq.f32 %v982_v11  ;;  %v3796_v16 = vand.u32 3, %v880_v36 }
 0x236   : > { %v1389_v58 = vmul.f32 %v1388_v60, %v1386_v2  ;;  %v759_v42 = vsel %vm2432_vm6, 0, %v2431_v6  ;;  %2842 = vsinq.f32 %v982_v11  ;;  %v1185_v27 = vsel %vm1102_vm15, %v1184_v32, %v1183_v50  ;;  %v4479_v50 = vld [vmem:[#allocation17_spill] sm:$0xff]  ;;  %v4483_v6 = vld [vmem:[#allocation27_spill] sm:$0xff] }
 0x237   : > { %v4470_v54 = vand.u32 2147483647, %v4468_v19  ;;  %v744_v48 = vadd.s32 %v3684_v26, %v3697_v8  ;;  %v760_v49 = vsub.s32 32, %v759_v42  ;;  %v764_v53 = vsub.s32 4294967266, %v759_v42 }
 0x238   : > { %v1493_v7 = vxor.u32 2147483648, %v1492_v62  ;;  %v774_v31 = vsub.s32 4, %v3736_v46  ;;  %v983_v25 = vsel %vm3774_vm2, 0, %v981_v13  ;;  %v4473_v3 = vand.u32 2147483647, %v3129_v51 }
 0x239   : > { %vm3802_vm7 = vcmp.le.f32.partialorder %v4470_v54, 0.7853982  ;;  %v761_v29 = vshll.u32 %v3749_v12, %v759_v42  ;;  %v762_v45 = vshrl.u32 %v744_v48, %v760_v49  ;;  %v765_v44 = vadd.s32 127, %v764_v53  ;;  %v2833_v8 = vpop.eup %2832 }
 0x23a   : > { %vm3813_vm8 = vcmp.le.f32.partialorder %v4473_v3, 0.7853982  ;;  %v1288_v14 = vsel %vm1205_vm1, %v1287_v35, %v1286_v17  ;;  %v1390_v38 = vxor.u32 2147483648, %v1389_v58  ;;  %vm886_vm9 = vcmp.eq.s32.totalorder %v3796_v16, 0  ;;  %v2835_v12 = vpop.eup %2834 }
 0x23b   : > { %v1085_v26 = vsel %vm3813_vm8, %v3129_v51, %v1082_v10  ;;  %v4476_v24 = vand.u32 2147483647, %v3285_v5  ;;  %v763_v20 = vor.u32 %v762_v45, %v761_v29  ;;  %v766_v15 = vshll.u32 %v765_v44, 23  ;;  %v4490_v45 = vld [vmem:[#allocation25_spill] sm:$0xff] }
 0x23c   : > { %vm889_vm11 = vcmp.eq.s32.totalorder %v3796_v16, 2  ;;  %v1494_v30 = vsel %vm1411_vm3, %v1493_v7, %v1492_v62  ;;  %v3836_v17 = vand.u32 3, %v983_v25  ;;  %v1083_v9 = vsub.s32 4, %v4479_v50  ;;  %v3839_v39 = vpop.eup %2836 }
 0x23d   : > { %vm3826_vm10 = vcmp.le.f32.partialorder %v4476_v24, 0.7853982  ;;  %2844 = vcosq.f32 %v1085_v26  ;;  %v767_v0 = vor.u32 4788187, %v766_v15  ;;  %v775_v22 = vsel %vm690_vm4, %v774_v31, %v3736_v46  ;;  %v3845_v43 = vpop.eup %2838 }
 0x23e   : > { %v1188_v33 = vsel %vm3826_vm10, %v3285_v5, %v1185_v27  ;;  %vm885_vm12 = vcmp.lt.s32.totalorder %v3796_v16, 2  ;;  %v890_v61 = vxor.u32 2147483648, %v2833_v8  ;;  %2846 = vsinq.f32 %v1085_v26 }
 0x23f   : > { %v1391_v1 = vsel %vm1308_vm5, %v1390_v38, %v1389_v58  ;;  %v887_v37 = vxor.u32 2147483648, %v2835_v12  ;;  %2848 = vcosq.f32 %v1188_v33  ;;  %v4480_v57 = vand.u32 2147483647, %v3261_v21  ;;  %v2841_v10 = vpop.eup %2840 }
 0x240   : > { %v768_v18 = vand.u32 2147483647, %v767_v0  ;;  %v770_v46 = vcvt.s32.f32 %v763_v20  ;;  %2850 = vsinq.f32 %v1188_v33  ;;  %v2843_v11 = vpop.eup %2842  ;;  %v777_v32 = vsel %vm3802_vm7, 0, %v775_v22  ;;  %v4491_v22 = vld [vmem:[#allocation29_spill] sm:$0xff] }
 0x241   : > { %vm3851_vm14 = vcmp.le.f32.partialorder %v4480_v57, 0.7853982  ;;  %vm989_vm2 = vcmp.eq.s32.totalorder %v3836_v17, 0  ;;  %vm992_vm6 = vcmp.eq.s32.totalorder %v3836_v17, 2  ;;  %v1186_v36 = vsub.s32 4, %v4483_v6 }
 0x242   : > { %v1291_v2 = vsel %vm3851_vm14, %v3261_v21, %v1288_v14  ;;  %v771_v62 = vmul.f32 %v770_v46, %v768_v18  ;;  %v891_v60 = vsel %vm889_vm11, %v890_v61, %v2835_v12  ;;  %v1084_v35 = vsel %vm999_vm13, %v1083_v9, %v4479_v50  ;;  %v4492_v46 = vld [vmem:[#allocation20_spill] sm:$0xff] }
 0x243   : > { %v4484_v13 = vand.u32 2147483647, %v4469_v23  ;;  %v888_v42 = vsel %vm886_vm9, %v2833_v8, %v887_v37  ;;  %v993_v27 = vxor.u32 2147483648, %v2841_v10  ;;  %2852 = vcosq.f32 %v1291_v2 }
 0x244   : > { %v772_v48 = vxor.u32 2147483648, %v771_v62  ;;  %v990_v49 = vxor.u32 2147483648, %v2843_v11  ;;  %v4487_v53 = vand.u32 2147483647, %v4467_v4  ;;  %v3885_v31 = vand.u32 3, %v777_v32 }
 0x245   : > { %vm3870_vm0 = vcmp.le.f32.partialorder %v4484_v13, 0.7853982  ;;  %v1187_v25 = vsel %vm1102_vm15, %v1186_v36, %v4483_v6  ;;  %v1289_v44 = vsub.s32 4, %v4490_v45  ;;  %v1392_v26 = vsub.s32 4, %v3658_v56  ;;  %v4493_v13 = vld [vmem:[#allocation23_spill] sm:$0xff] }
 0x246   : > { %v1394_v54 = vsel %vm3870_vm0, %v4469_v23, %v1391_v1  ;;  %vm3881_vm13 = vcmp.le.f32.partialorder %v4487_v53, 0.7853982  ;;  %v773_v29 = vsel %vm690_vm4, %v772_v48, %v771_v62  ;;  %v892_v38 = vsel %vm885_vm12, %v888_v42, %v891_v60 }
 0x247   : > { %2854 = vcosq.f32 %v1394_v54  ;;  %v1497_v3 = vsel %vm3881_vm13, %v4467_v4, %v1494_v30  ;;  %v2845_v8 = vpop.eup %2844  ;;  %v776_v14 = vsel %vm3802_vm7, %v4468_v19, %v773_v29  ;;  %v1086_v24 = vsel %vm3813_vm8, 0, %v1084_v35 }
 0x248   : > { %2856 = vsinq.f32 %v1394_v54  ;;  %v2847_v12 = vpop.eup %2846  ;;  %v991_v20 = vsel %vm989_vm2, %v2841_v10, %v990_v49  ;;  %v994_v15 = vsel %vm992_vm6, %v993_v27, %v2843_v11  ;;  %v1189_v33 = vsel %vm3826_vm10, 0, %v1187_v25 }
 0x249   : > { %2858 = vsinq.f32 %v1291_v2  ;;  %v2849_v59 = vpop.eup %2848  ;;  %vm883_vm15 = vweird.f32 %v3118_v41  ;;  %vm988_vm4 = vcmp.lt.s32.totalorder %v3836_v17, 2  ;;  %v1090_v28 = vand.u32 3, %v1086_v24 }
 0x24a   : > { %2860 = vcosq.f32 %v1497_v3  ;;  %v2851_v16 = vpop.eup %2850  ;;  %v1290_v30 = vsel %vm1205_vm1, %v1289_v44, %v4490_v45  ;;  %v1393_v50 = vsel %vm1308_vm5, %v1392_v26, %v3658_v56  ;;  %v893_v9 = vsel %vm883_vm15, nan, %v892_v38 }
 0x24b   : > { %2862 = vcosq.f32 %v776_v14  ;;  %v995_v55 = vsel %vm988_vm4, %v991_v20, %v994_v15  ;;  %v1193_v0 = vand.u32 3, %v1189_v33  ;;  %v1495_v61 = vsub.s32 4, %v4491_v22 }
 0x24c   : > { %2864 = vsinq.f32 %v776_v14  ;;  %vm786_vm7 = vcmp.eq.s32.totalorder %v3885_v31, 2  ;;  %vm986_vm8 = vweird.f32 %v3144_v63  ;;  %v1093_v41 = vxor.u32 2147483648, %v2847_v12 }
 0x24d   : > { %2866 = vsinq.f32 %v1497_v3  ;;  %v1096_v17 = vxor.u32 2147483648, %v2845_v8  ;;  %v2853_v1 = vpop.eup %2852  ;;  %vm783_vm9 = vcmp.eq.s32.totalorder %v3885_v31, 0  ;;  %v1196_v37 = vxor.u32 2147483648, %v2851_v16 }
 0x24e   : > { %v1199_v57 = vxor.u32 2147483648, %v2849_v59  ;;  %v1292_v56 = vsel %vm3851_vm14, 0, %v1290_v30  ;;  %v1395_v10 = vsel %vm3870_vm0, 0, %v1393_v50  ;;  %vm782_vm1 = vcmp.lt.s32.totalorder %v3885_v31, 2  ;;  %v4494_v50 = vld [vmem:[#allocation11_spill] sm:$0xff] }
 0x24f   : > { %v3928_v2 = vmul.f32 %v4492_v46, %v893_v9  ;;  %v996_v63 = vsel %vm986_vm8, nan, %v995_v55  ;;  %vm1091_vm5 = vcmp.lt.s32.totalorder %v1090_v28, 2  ;;  %vm1092_vm10 = vcmp.eq.s32.totalorder %v1090_v28, 0  ;;  %v4505_v46 = vld [vmem:[#allocation18_spill] sm:$0xff] }
 0x250   : > { %vm780_vm11 = vweird.f32 %v4468_v19  ;;  %vm1095_vm12 = vcmp.eq.s32.totalorder %v1090_v28, 2  ;;  %vm1195_vm2 = vcmp.eq.s32.totalorder %v1193_v0, 0  ;;  %vm1198_vm6 = vcmp.eq.s32.totalorder %v1193_v0, 2  ;;  %v4496_v19 = vld [vmem:[#allocation12_spill] sm:$0xff] }
 0x251   : > { %v2855_v18 = vpop.eup %2854  ;;  %v1496_v52 = vsel %vm1411_vm3, %v1495_v61, %v4491_v22  ;;  %vm1089_vm0 = vweird.f32 %v3129_v51  ;;  %v1094_v6 = vsel %vm1092_vm10, %v2845_v8, %v1093_v41  ;;  %v1097_v36 = vsel %vm1095_vm12, %v1096_v17, %v2847_v12 }
 0x252   : > { %v2857_v11 = vpop.eup %2856  ;;  %v1296_v62 = vand.u32 3, %v1292_v56  ;;  %v1399_v60 = vand.u32 3, %v1395_v10  ;;  %v1514_v58 = vmul.f32 %v4493_v13, %v996_v63  ;;  %vm1192_vm14 = vweird.f32 %v3285_v5  ;;  %v4498_v10 = vld [vmem:[#allocation22_spill] sm:$0xff]  ;;  %v2174_v13 = vld [vmem:[%s4372_s11 + $0x10] sm:$0xff] }
 0x253   : > { %v2859_v32 = vpop.eup %2858  ;;  %v1197_v42 = vsel %vm1195_vm2, %v2849_v59, %v1196_v37  ;;  %v1200_v27 = vsel %vm1198_vm6, %v1199_v57, %v2851_v16  ;;  %v1302_v48 = vxor.u32 2147483648, %v2853_v1  ;;  %v1402_v49 = vxor.u32 2147483648, %v2857_v11  ;;  %v4497_v57 = vld [vmem:[#allocation9_spill] sm:$0xff]  ;;  %v4506_v63 = vld [vmem:[#allocation10_spill] sm:$0xff] }
 0x254   : > { %v2861_v35 = vpop.eup %2860  ;;  %v1405_v53 = vxor.u32 2147483648, %v2855_v18  ;;  %v1498_v25 = vsel %vm3881_vm13, 0, %v1496_v52  ;;  %v1098_v45 = vsel %vm1091_vm5, %v1094_v6, %v1097_v36  ;;  %vm1194_vm3 = vcmp.lt.s32.totalorder %v1193_v0, 2  ;;  %v4495_v0 = vld [vmem:[#allocation21_spill] sm:$0xff]  ;;  %v4507_v52 = vld [vmem:[#allocation28_spill] sm:$0xff] }
 0x255   : > { %v2863_v54 = vpop.eup %2862  ;;  %v1299_v44 = vxor.u32 2147483648, %v2859_v32  ;;  %vm1298_vm15 = vcmp.eq.s32.totalorder %v1296_v62, 0  ;;  %vm1301_vm4 = vcmp.eq.s32.totalorder %v1296_v62, 2  ;;  %vm1401_vm8 = vcmp.eq.s32.totalorder %v1399_v60, 0 }
 0x256   : > { %v2865_v3 = vpop.eup %2864  ;;  %v787_v29 = vxor.u32 2147483648, %v2863_v54  ;;  %v1201_v38 = vsel %vm1194_vm3, %v1197_v42, %v1200_v27  ;;  %vm1404_vm10 = vcmp.eq.s32.totalorder %v1399_v60, 2  ;;  %v1502_v24 = vand.u32 3, %v1498_v25  ;;  %v4005_v42 = vld [vmem:[%s4368_s7] ss:$0 sm:$0xff] }
 0x257   : > { %v2867_v26 = vpop.eup %2866  ;;  %v784_v8 = vxor.u32 2147483648, %v2865_v3  ;;  %v1303_v12 = vsel %vm1301_vm4, %v1302_v48, %v2859_v32  ;;  %v1403_v20 = vsel %vm1401_vm8, %v2855_v18, %v1402_v49  ;;  %v1406_v15 = vsel %vm1404_vm10, %v1405_v53, %v2857_v11  ;;  %v4010_v27 = vld [vmem:[%s4370_s9] ss:$0 sm:$0xff] }
 0x258   : > { %v788_v14 = vsel %vm786_vm7, %v787_v29, %v2865_v3  ;;  %v1300_v59 = vsel %vm1298_vm15, %v2853_v1, %v1299_v44  ;;  %v1505_v16 = vxor.u32 2147483648, %v2867_v26  ;;  %v1508_v28 = vxor.u32 2147483648, %v2861_v35 }
 0x259   : > { %v785_v7 = vsel %vm783_vm9, %v2863_v54, %v784_v8  ;;  %v1522_v9 = vmul.f32 %v1514_v58, %v4494_v50  ;;  %v1202_v55 = vsel %vm1192_vm14, nan, %v1201_v38  ;;  %vm1400_vm13 = vcmp.lt.s32.totalorder %v1399_v60, 2  ;;  %v2175_v58 = vld [vmem:[%s4372_s11 + $0x18] sm:$0xff]  ;;  %v4519_v54 = vld [vmem:[#allocation13_spill] sm:$0xff] }
 0x25a   : > { %v789_v33 = vsel %vm782_vm1, %v785_v7, %v788_v14  ;;  %v1099_v61 = vsel %vm1089_vm0, nan, %v1098_v45  ;;  %vm1297_vm7 = vcmp.lt.s32.totalorder %v1296_v62, 2  ;;  %v1407_v31 = vsel %vm1400_vm13, %v1403_v20, %v1406_v15  ;;  %v4512_v62 = vld [vmem:[#allocation16_spill] sm:$0xff]  ;;  %v4520_v20 = vld [vmem:[#allocation15_spill] sm:$0xff] }
 0x25b   : > { %v790_v30 = vsel %vm780_vm11, nan, %v789_v33  ;;  %v1304_v41 = vsel %vm1297_vm7, %v1300_v59, %v1303_v12  ;;  %vm1398_vm9 = vweird.f32 %v4469_v23  ;;  %vm1504_vm1 = vcmp.eq.s32.totalorder %v1502_v24, 0 }
 0x25c   : > { %v1512_v22 = vmul.f32 %v4495_v0, %v790_v30  ;;  %vm1507_vm5 = vcmp.eq.s32.totalorder %v1502_v24, 2  ;;  %v1516_v1 = vmul.f32 %v3740_v40, %v1202_v55  ;;  %v1506_v37 = vsel %vm1504_vm1, %v2861_v35, %v1505_v16 }
 0x25d   : > { %v1509_v5 = vsel %vm1507_vm5, %v1508_v28, %v2867_v26  ;;  %v1521_v56 = vmul.f32 %v3928_v2, %v4497_v57  ;;  %v1515_v18 = vmul.f32 %v4498_v10, %v1099_v61  ;;  %vm1295_vm11 = vweird.f32 %v3261_v21 }
 0x25e   : > { %v1520_v17 = vmul.f32 %v1512_v22, %v4496_v19  ;;  %v1408_v51 = vsel %vm1398_vm9, nan, %v1407_v31  ;;  %vm4499_vm12 = vcmask 523264   ;;  %v1305_v23 = vsel %vm1295_vm11, nan, %v1304_v41 }
 0x25f   : > { %vm4500_vm2 = vmmov %vm4499_vm12  ;;  %vm1503_vm6 = vcmp.lt.s32.totalorder %v1502_v24, 2  ;;  %v1524_v2 = vmul.f32 %v1516_v1, %v4505_v46  ;;  %v1518_v21 = vmul.f32 %v3845_v43, %v1408_v51  ;;  %v1523_v11 = vmul.f32 %v1515_v18, %v4506_v63 }
 0x260   : > { %2603 = vmatprep.mubr.msk.f32.mxu1 %vm4499_vm12, %v1520_v17  ;;  %2631 = vmatprep.mubr.msk.f32.mxu0 %vm4500_vm2, %v1520_v17  ;;  %vm4501_vm0 = vmmov %vm4500_vm2  ;;  %v1510_v40 = vsel %vm1503_vm6, %v1506_v37, %v1509_v5  ;;  %v1517_v32 = vmul.f32 %v4507_v52, %v1305_v23  ;;  %vm1501_vm4 = vweird.f32 %v4467_v4  ;;  %vm2196_vm6 = vcmask 261120  }
 0x261   : > { %2604 = vmatmul.mubr.msk.f32.vlgmr.msra.gmra.mrb[0].mxu1 %vm4501_vm0, %v1521_v56  ;;  %vm4502_vm14 = vmmov %vm4501_vm0  ;;  %v1511_v6 = vsel %vm1501_vm4, nan, %v1510_v40  ;;  %v1526_v36 = vmul.f32 %v1518_v21, %v3390_v47  ;;  %v2168_v47 = vld [vmem:[%s4371_s10] sm:$0xff]  ;;  %v2938_v35 = vmov 0   ;;  %v4013_v48 = vsub.s32 1, %v4519_v54 }
 0x262   : > { %2632 = vmatmul.mubr.msk.f32.vlgmr.msra.gmra.mrb[8].mxu0 %vm4502_vm14, %v1521_v56  ;;  %vm4503_vm3 = vmmov %vm4501_vm0  ;;  %v1525_v60 = vmul.f32 %v1517_v32, %v4512_v62  ;;  %v1519_v43 = vmul.f32 %v3839_v39, %v1511_v6  ;;  %v2172_v39 = vld [vmem:[%s4372_s11] sm:$0xff]  ;;  %2818 = vset.pattern.permute.xlu1 %v2938_v35  ;;  %v4016_v49 = vsub.s32 2, %v4519_v54  ;;  %v4019_v53 = vsub.s32 3, %v4519_v54 }
 0x263   : > { %2606 = vmatprep.mubr.msk.f32.mxu1 %vm4503_vm3, %v1522_v9  ;;  %vm4504_vm15 = vmmov %vm4501_vm0  ;;  %2819 = vset.pattern.permute.xlu0 %v2938_v35  ;;  %v4025_v26 = vsub.s32 4, %v4519_v54  ;;  %v4028_v8 = vsub.s32 5, %v4519_v54  ;;  %v4031_v14 = vsub.s32 6, %v4519_v54  ;;  %v4043_v12 = vsub.s32 7, %v4519_v54 }
 0x264   : > { %2634 = vmatprep.mubr.msk.f32.mxu0 %vm4504_vm15, %v1522_v9  ;;  %vm4508_vm8 = vmmov %vm4501_vm0  ;;  %v1527_v4 = vmul.f32 %v1519_v43, %v3386_v34  ;;  %2178 = vperm.xlu1 %2818, %v2172_v39   ;;  %v2173_v34 = vld [vmem:[%s4372_s11 + $0x8] sm:$0xff] }
 0x265   : > { %2607 = vmatmul.mubr.msk.f32.gmra.mrb[2].mxu1 %vm4508_vm8, %v1523_v11  ;;  %vm4509_vm10 = vmmov %vm4501_vm0 }
 0x266   : > { %2635 = vmatmul.mubr.msk.f32.gmra.mrb[10].mxu0 %vm4509_vm10, %v1523_v11  ;;  %vm4510_vm13 = vmmov %vm4501_vm0 }
 0x267   : > { %2609 = vmatprep.mubr.msk.f32.mxu1 %vm4510_vm13, %v1524_v2  ;;  %vm4511_vm7 = vmmov %vm4501_vm0 }
 0x268   : > { %2637 = vmatprep.mubr.msk.f32.mxu0 %vm4511_vm7, %v1524_v2  ;;  %vm4513_vm9 = vmmov %vm4501_vm0  ;;  %2183 = vperm.xlu1 %2818, %v2173_v34  }
 0x269   : > { %2610 = vmatmul.mubr.msk.f32.gmra.mrb[4].mxu1 %vm4513_vm9, %v1525_v60  ;;  %vm4514_vm1 = vmmov %vm4501_vm0 }
 0x26a   : > { %2638 = vmatmul.mubr.msk.f32.gmra.mrb[12].mxu0 %vm4514_vm1, %v1525_v60  ;;  %vm4515_vm5 = vmmov %vm4501_vm0 }
 0x26b   : > { %2612 = vmatprep.mubr.msk.f32.mxu1 %vm4515_vm5, %v1526_v36  ;;  %vm4516_vm11 = vmmov %vm4501_vm0 }
 0x26c   : > { %2640 = vmatprep.mubr.msk.f32.mxu0 %vm4516_vm11, %v1526_v36  ;;  %vm4517_vm12 = vmmov %vm4501_vm0  ;;  %2188 = vperm.xlu1 %2818, %v2174_v13  }
 0x26d   : > { %2613 = vmatmul.mubr.msk.f32.gmra.mrb[6].mxu1 %vm4517_vm12, %v1527_v4  ;;  %vm4518_vm2 = vmmov %vm4501_vm0 }
 0x26e   : > { %2641 = vmatmul.mubr.msk.f32.gmra.mrb[14].mxu0 %vm4518_vm2, %v1527_v4  ;;  %2659 = vmatprep.mubr.msk.f32.mxu1 %vm2196_vm6, %v2168_v47  ;;  %vm4155_vm0 = vmpackc.low %vm2196_vm6, %vm2196_vm6 }
 0x26f   : > { %vm4523_vm14 = vmmov %vm4514_vm1 }
 0x270   : > { %2193 = vperm.xlu1 %2818, %v2175_v58   ;;  %vm4524_vm3 = vmmov %vm4514_vm1 }
 0x271   : > { %vm4525_vm15 = vmmov %vm4514_vm1 }
 0x272   : > { %vm4526_vm4 = vmmov %vm4514_vm1 }
 0x334   : > { %v2605_v25 = vpop.f32.mrb[0].mxu1 }
 0x335   : > { %v2633_v3 = vpop.f32.mrb[8].mxu0  ;;  %v4022_v29 = vadd.f32 %v2605_v25, %v4005_v42  ;;  %v1633_v45 = vpop.f32.mrb[1].mxu1 }
 0x336   : > { %v1753_v44 = vpop.f32.mrb[9].mxu0  ;;  %v4034_v38 = vadd.f32 %v2633_v3, %v4010_v27  ;;  %v4037_v24 = vadd.f32 %v4005_v42, %v1633_v45 }
 0x337   : > { %v4040_v7 = vadd.f32 %v4010_v27, %v1753_v44  ;;  %v1799_v15 = vrot.slane %v4022_v29, %v4520_v20  ;;  %v1839_v33 = vrot.slane %v4022_v29, %v4013_v48  ;;  %v1879_v59 = vrot.slane %v4022_v29, %v4016_v49 }
 0x338   : > { %v1927_v16 = vrot.slane %v4022_v29, %v4019_v53  ;;  %v2608_v28 = vpop.f32.mrb[2].mxu1  ;;  %v1795_v50 = vrot.slane %v4037_v24, %v4520_v20  ;;  %v1835_v9 = vrot.slane %v4037_v24, %v4013_v48  ;;  %v1875_v55 = vrot.slane %v4037_v24, %v4016_v49 }
 0x339   : > { %v2636_v30 = vpop.f32.mrb[10].mxu0  ;;  %v1923_v0 = vrot.slane %v4037_v24, %v4019_v53  ;;  %v4062_v22 = vadd.f32 %v2608_v28, %v4005_v42  ;;  %v1643_v31 = vpop.f32.mrb[3].mxu1  ;;  %v1825_v19 = vmul.f32 %v1799_v15, %v4040_v7  ;;  %v1865_v17 = vmul.f32 %v1839_v33, %v4034_v38 }
 0x33a   : > { %v4065_v61 = vadd.f32 %v2636_v30, %v4010_v27  ;;  %v1763_v41 = vpop.f32.mrb[11].mxu0  ;;  %v4070_v1 = vadd.f32 %v4005_v42, %v1643_v31  ;;  %v1824_v5 = vmul.f32 %v1795_v50, %v4040_v7  ;;  %v1864_v57 = vmul.f32 %v1835_v9, %v4034_v38 }
 0x33b   : > { %v4073_v37 = vadd.f32 %v4010_v27, %v1763_v41  ;;  %v1971_v18 = vrot.slane %v4037_v24, %v4025_v26  ;;  %v1975_v51 = vrot.slane %v4022_v29, %v4025_v26  ;;  %v2019_v21 = vrot.slane %v4037_v24, %v4028_v8 }
 0x33c   : > { %v1952_v56 = vmul.f32 %v1923_v0, %v4065_v61  ;;  %v1953_v10 = vmul.f32 %v1927_v16, %v4065_v61  ;;  %v2611_v23 = vpop.f32.mrb[4].mxu1  ;;  %v2023_v63 = vrot.slane %v4022_v29, %v4028_v8  ;;  %v2067_v34 = vrot.slane %v4037_v24, %v4031_v14 }
 0x33d   : > { %v2639_v40 = vpop.f32.mrb[12].mxu0  ;;  %v1904_v46 = vmul.f32 %v1875_v55, %v4073_v37  ;;  %v1905_v2 = vmul.f32 %v1879_v59, %v4073_v37  ;;  %v4090_v11 = vadd.f32 %v2611_v23, %v4005_v42  ;;  %v1653_v32 = vpop.f32.mrb[5].mxu1  ;;  %v2071_v13 = vrot.slane %v4022_v29, %v4031_v14 }
 0x33e   : > { %v4093_v52 = vadd.f32 %v2639_v40, %v4010_v27  ;;  %v1773_v6 = vpop.f32.mrb[13].mxu0  ;;  %v1960_v36 = vadd.f32 %v1952_v56, %v1864_v57  ;;  %v1961_v62 = vadd.f32 %v1953_v10, %v1865_v17  ;;  %v4096_v60 = vadd.f32 %v4005_v42, %v1653_v32 }
 0x33f   : > { %v4099_v43 = vadd.f32 %v4010_v27, %v1773_v6  ;;  %v1912_v4 = vadd.f32 %v1904_v46, %v1824_v5  ;;  %v1913_v47 = vadd.f32 %v1905_v2, %v1825_v19  ;;  %v2115_v45 = vrot.slane %v4037_v24, %v4043_v12 }
 0x340   : > { %v2048_v39 = vmul.f32 %v2019_v21, %v4093_v52  ;;  %v2049_v35 = vmul.f32 %v2023_v63, %v4093_v52  ;;  %v2614_v58 = vpop.f32.mrb[6].mxu1  ;;  %v2119_v44 = vrot.slane %v4022_v29, %v4043_v12  ;;  %v1803_v31 = vrot.slane %v4070_v1, %v4520_v20 }
 0x341   : > { %v2642_v54 = vpop.f32.mrb[14].mxu0  ;;  %v2000_v25 = vmul.f32 %v1971_v18, %v4099_v43  ;;  %v2001_v3 = vmul.f32 %v1975_v51, %v4099_v43  ;;  %v4114_v15 = vadd.f32 %v2614_v58, %v4005_v42  ;;  %v1663_v59 = vpop.f32.mrb[7].mxu1  ;;  %v1807_v41 = vrot.slane %v4062_v22, %v4520_v20 }
 0x342   : > { %v4117_v33 = vadd.f32 %v2642_v54, %v4010_v27  ;;  %v1783_v16 = vpop.f32.mrb[15].mxu0  ;;  %v2056_v28 = vadd.f32 %v2048_v39, %v1960_v36  ;;  %v2057_v30 = vadd.f32 %v2049_v35, %v1961_v62  ;;  %v4120_v50 = vadd.f32 %v4005_v42, %v1663_v59 }
 0x343   : > { %v4123_v9 = vadd.f32 %v4010_v27, %v1783_v16  ;;  %v2008_v24 = vadd.f32 %v2000_v25, %v1912_v4  ;;  %v2009_v55 = vadd.f32 %v2001_v3, %v1913_v47  ;;  %v1843_v27 = vrot.slane %v4070_v1, %v4013_v48 }
 0x344   : > { %v2144_v29 = vmul.f32 %v2115_v45, %v4117_v33  ;;  %v2145_v0 = vmul.f32 %v2119_v44, %v4117_v33  ;;  %v1847_v17 = vrot.slane %v4062_v22, %v4013_v48  ;;  %v1826_v56 = vmul.f32 %v1803_v31, %v4040_v7 }
 0x345   : > { %v2096_v19 = vmul.f32 %v2067_v34, %v4123_v9  ;;  %v2097_v42 = vmul.f32 %v2071_v13, %v4123_v9  ;;  %v1827_v10 = vmul.f32 %v1807_v41, %v4040_v7  ;;  %v1866_v23 = vmul.f32 %v1843_v27, %v4034_v38 }
 0x346   : > { %v2152_v5 = vadd.f32 %v2144_v29, %v2056_v28  ;;  %v2153_v57 = vadd.f32 %v2145_v0, %v2057_v30  ;;  %v1867_v40 = vmul.f32 %v1847_v17, %v4034_v38  ;;  %v1883_v46 = vrot.slane %v4070_v1, %v4016_v49 }
 0x347   : > { %v2104_v18 = vadd.f32 %v2096_v19, %v2008_v24  ;;  %v2105_v51 = vadd.f32 %v2097_v42, %v2009_v55  ;;  %v1887_v2 = vrot.slane %v4062_v22, %v4016_v49  ;;  %v1931_v21 = vrot.slane %v4070_v1, %v4019_v53 }
 0x348   : > { %v1935_v63 = vrot.slane %v4062_v22, %v4019_v53  ;;  %v1979_v36 = vrot.slane %v4070_v1, %v4025_v26  ;;  %v1983_v62 = vrot.slane %v4062_v22, %v4025_v26  ;;  %v1906_v47 = vmul.f32 %v1883_v46, %v4073_v37 }
 0x349   : > { %v2160_v32 = vadd.f32 %v2152_v5, %v2104_v18  ;;  %v2161_v6 = vadd.f32 %v2153_v57, %v2105_v51  ;;  %v1907_v39 = vmul.f32 %v1887_v2, %v4073_v37  ;;  %v1954_v35 = vmul.f32 %v1931_v21, %v4065_v61 }
 0x34a   : > { %v1955_v34 = vmul.f32 %v1935_v63, %v4065_v61  ;;  %v2002_v58 = vmul.f32 %v1979_v36, %v4099_v43  ;;  %v2003_v54 = vmul.f32 %v1983_v62, %v4099_v43  ;;  %v2027_v25 = vrot.slane %v4070_v1, %v4028_v8 }
 0x34b   : > { %v2713_v13 = vpack.c.bf16 %v2161_v6, %v2160_v32  ;;  %v1914_v3 = vadd.f32 %v1906_v47, %v1826_v56  ;;  %v1915_v45 = vadd.f32 %v1907_v39, %v1827_v10  ;;  %v1962_v44 = vadd.f32 %v1954_v35, %v1866_v23 }
 0x34c   : > { %v1963_v59 = vadd.f32 %v1955_v34, %v1867_v40  ;;  %v2031_v16 = vrot.slane %v4062_v22, %v4028_v8  ;;  %v2050_v28 = vmul.f32 %v2027_v25, %v4093_v52  ;;  %v2075_v30 = vrot.slane %v4070_v1, %v4031_v14 }
 0x34d   : > { %2715 = vmatprep.subr.msk.bf16.mxu1 %vm4155_vm0, %v2713_v13  ;;  %v2079_v24 = vrot.slane %v4062_v22, %v4031_v14  ;;  %v2010_v55 = vadd.f32 %v2002_v58, %v1914_v3  ;;  %v2011_v29 = vadd.f32 %v2003_v54, %v1915_v45  ;;  %v2123_v0 = vrot.slane %v4070_v1, %v4043_v12 }
 0x34e   : > { %2718 = vmatpush3.bf16.xpose.msk.msra.mxu1 %vm4155_vm0, %v2713_v13  ;;  %v2127_v31 = vrot.slane %v4062_v22, %v4043_v12  ;;  %v2051_v41 = vmul.f32 %v2031_v16, %v4093_v52  ;;  %v2058_v19 = vadd.f32 %v2050_v28, %v1962_v44  ;;  %v2098_v42 = vmul.f32 %v2075_v30, %v4123_v9 }
 0x34f   : > { %v2099_v27 = vmul.f32 %v2079_v24, %v4123_v9  ;;  %v2146_v17 = vmul.f32 %v2123_v0, %v4117_v33  ;;  %v1811_v57 = vrot.slane %v4096_v60, %v4520_v20  ;;  %v1815_v1 = vrot.slane %v4090_v11, %v4520_v20 }
 0x350   : > { %v2147_v5 = vmul.f32 %v2127_v31, %v4117_v33  ;;  %v2059_v56 = vadd.f32 %v2051_v41, %v1963_v59  ;;  %v2106_v10 = vadd.f32 %v2098_v42, %v2010_v55  ;;  %v1851_v18 = vrot.slane %v4096_v60, %v4013_v48 }
 0x351   : > { %v2107_v22 = vadd.f32 %v2099_v27, %v2011_v29  ;;  %v2154_v51 = vadd.f32 %v2146_v17, %v2058_v19  ;;  %v1828_v23 = vmul.f32 %v1811_v57, %v4040_v7  ;;  %v1829_v40 = vmul.f32 %v1815_v1, %v4040_v7 }
 0x352   : > { %v1855_v46 = vrot.slane %v4090_v11, %v4013_v48  ;;  %v2155_v2 = vadd.f32 %v2147_v5, %v2059_v56  ;;  %v1868_v21 = vmul.f32 %v1851_v18, %v4034_v38  ;;  %v1891_v63 = vrot.slane %v4096_v60, %v4016_v49 }
 0x353   : > { %v1895_v32 = vrot.slane %v4090_v11, %v4016_v49  ;;  %v2162_v6 = vadd.f32 %v2154_v51, %v2106_v10  ;;  %v1939_v62 = vrot.slane %v4096_v60, %v4019_v53  ;;  %v1943_v47 = vrot.slane %v4090_v11, %v4019_v53 }
 0x354   : > { %v1869_v36 = vmul.f32 %v1855_v46, %v4034_v38  ;;  %v2163_v39 = vadd.f32 %v2155_v2, %v2107_v22  ;;  %v1908_v35 = vmul.f32 %v1891_v63, %v4073_v37  ;;  %v1987_v13 = vrot.slane %v4096_v60, %v4025_v26 }
 0x355   : > { %v1909_v34 = vmul.f32 %v1895_v32, %v4073_v37  ;;  %v1956_v58 = vmul.f32 %v1939_v62, %v4065_v61  ;;  %v1957_v54 = vmul.f32 %v1943_v47, %v4065_v61  ;;  %v1991_v25 = vrot.slane %v4090_v11, %v4025_v26 }
 0x356   : > { %v2035_v3 = vrot.slane %v4096_v60, %v4028_v8  ;;  %v2719_v45 = vpack.c.bf16 %v2163_v39, %v2162_v6  ;;  %v1916_v44 = vadd.f32 %v1908_v35, %v1828_v23  ;;  %v2004_v16 = vmul.f32 %v1987_v13, %v4099_v43 }
 0x357   : > { %v1917_v59 = vadd.f32 %v1909_v34, %v1829_v40  ;;  %v1964_v28 = vadd.f32 %v1956_v58, %v1868_v21  ;;  %v1965_v30 = vadd.f32 %v1957_v54, %v1869_v36  ;;  %v2005_v24 = vmul.f32 %v1991_v25, %v4099_v43 }
 0x358   : > { %v2039_v55 = vrot.slane %v4090_v11, %v4028_v8  ;;  %2721 = vmatprep.subr.msk.bf16.mxu1 %vm4155_vm0, %v2719_v45  ;;  %v2012_v29 = vadd.f32 %v2004_v16, %v1916_v44  ;;  %v2052_v0 = vmul.f32 %v2035_v3, %v4093_v52  ;;  %v2083_v31 = vrot.slane %v4096_v60, %v4031_v14 }
 0x359   : > { %v2087_v41 = vrot.slane %v4090_v11, %v4031_v14  ;;  %2724 = vmatpush3.bf16.xpose.msk.msra.mxu1 %vm4155_vm0, %v2719_v45  ;;  %v2013_v19 = vadd.f32 %v2005_v24, %v1917_v59  ;;  %v2131_v27 = vrot.slane %v4096_v60, %v4043_v12  ;;  %v2135_v17 = vrot.slane %v4090_v11, %v4043_v12 }
 0x35a   : > { %v2053_v42 = vmul.f32 %v2039_v55, %v4093_v52  ;;  %v2060_v5 = vadd.f32 %v2052_v0, %v1964_v28  ;;  %v2100_v57 = vmul.f32 %v2083_v31, %v4123_v9  ;;  %v1819_v56 = vrot.slane %v4120_v50, %v4520_v20 }
 0x35b   : > { %v2101_v1 = vmul.f32 %v2087_v41, %v4123_v9  ;;  %v2148_v22 = vmul.f32 %v2131_v27, %v4117_v33  ;;  %v2149_v18 = vmul.f32 %v2135_v17, %v4117_v33  ;;  %v1823_v51 = vrot.slane %v4114_v15, %v4520_v20 }
 0x35c   : > { %v2061_v10 = vadd.f32 %v2053_v42, %v1965_v30  ;;  %v2108_v60 = vadd.f32 %v2100_v57, %v2012_v29  ;;  %v1830_v11 = vmul.f32 %v1819_v56, %v4040_v7  ;;  %v1859_v40 = vrot.slane %v4120_v50, %v4013_v48 }
 0x35d   : > { %v2109_v23 = vadd.f32 %v2101_v1, %v2013_v19  ;;  %v2156_v46 = vadd.f32 %v2148_v22, %v2060_v5  ;;  %v1831_v21 = vmul.f32 %v1823_v51, %v4040_v7  ;;  %v1863_v63 = vrot.slane %v4114_v15, %v4013_v48 }
 0x35e   : > { %v2157_v2 = vadd.f32 %v2149_v18, %v2061_v10  ;;  %v1870_v32 = vmul.f32 %v1859_v40, %v4034_v38  ;;  %v1899_v6 = vrot.slane %v4120_v50, %v4016_v49  ;;  %v1903_v20 = vrot.slane %v4114_v15, %v4016_v49 }
 0x35f   : > { %v1947_v36 = vrot.slane %v4120_v50, %v4019_v53  ;;  %v2164_v62 = vadd.f32 %v2156_v46, %v2108_v60  ;;  %v1871_v39 = vmul.f32 %v1863_v63, %v4034_v38  ;;  %v1951_v7 = vrot.slane %v4114_v15, %v4019_v53 }
 0x360   : > { %v2165_v47 = vadd.f32 %v2157_v2, %v2109_v23  ;;  %v1910_v48 = vmul.f32 %v1899_v6, %v4073_v37  ;;  %v1911_v35 = vmul.f32 %v1903_v20, %v4073_v37  ;;  %v1995_v13 = vrot.slane %v4120_v50, %v4025_v26 }
 0x361   : > { %v1958_v34 = vmul.f32 %v1947_v36, %v4065_v61  ;;  %v1959_v58 = vmul.f32 %v1951_v7, %v4065_v61  ;;  %v1999_v54 = vrot.slane %v4114_v15, %v4025_v26  ;;  %v2043_v38 = vrot.slane %v4120_v50, %v4028_v8 }
 0x362   : > { %v2725_v49 = vpack.c.bf16 %v2165_v47, %v2164_v62  ;;  %v1918_v25 = vadd.f32 %v1910_v48, %v1830_v11  ;;  %v1919_v53 = vadd.f32 %v1911_v35, %v1831_v21  ;;  %v2006_v45 = vmul.f32 %v1995_v13, %v4099_v43 }
 0x363   : > { %v1966_v3 = vadd.f32 %v1958_v34, %v1870_v32  ;;  %v1967_v37 = vadd.f32 %v1959_v58, %v1871_v39  ;;  %v2007_v44 = vmul.f32 %v1999_v54, %v4099_v43  ;;  %v2047_v61 = vrot.slane %v4114_v15, %v4028_v8 }
 0x364   : > { %2727 = vmatprep.subr.msk.bf16.mxu1 %vm4155_vm0, %v2725_v49  ;;  %v2054_v59 = vmul.f32 %v2043_v38, %v4093_v52  ;;  %v2014_v26 = vadd.f32 %v2006_v45, %v1918_v25  ;;  %v2091_v16 = vrot.slane %v4120_v50, %v4031_v14  ;;  %v2095_v28 = vrot.slane %v4114_v15, %v4031_v14 }
 0x365   : > { %2730 = vmatpush3.bf16.xpose.msk.msra.mxu1 %vm4155_vm0, %v2725_v49  ;;  %v2139_v30 = vrot.slane %v4120_v50, %v4043_v12  ;;  %v2015_v24 = vadd.f32 %v2007_v44, %v1919_v53  ;;  %v2055_v43 = vmul.f32 %v2047_v61, %v4093_v52  ;;  %v2143_v8 = vrot.slane %v4114_v15, %v4043_v12  ;;  %v2169_v12 = vld [vmem:[%s4371_s10 + $0x8] sm:$0xff]  ;;  %v2170_v15 = vld [vmem:[%s4371_s10 + $0x10] sm:$0xff] }
 0x366   : > { %v2062_v55 = vadd.f32 %v2054_v59, %v1966_v3  ;;  %v2102_v29 = vmul.f32 %v2091_v16, %v4123_v9  ;;  %v2103_v0 = vmul.f32 %v2095_v28, %v4123_v9  ;;  %v2179_v9 = vpop.permute.xlu1 %2178 }
 0x367   : > { %v2150_v31 = vmul.f32 %v2139_v30, %v4117_v33  ;;  %v2063_v41 = vadd.f32 %v2055_v43, %v1967_v37  ;;  %v2151_v19 = vmul.f32 %v2143_v8, %v4117_v33  ;;  %v2171_v33 = vld [vmem:[%s4371_s10 + $0x18] sm:$0xff] }
 0x368   : > { %v2110_v14 = vadd.f32 %v2102_v29, %v2014_v26  ;;  %v2111_v42 = vadd.f32 %v2103_v0, %v2015_v24 }
 0x369   : > { %v2158_v50 = vadd.f32 %v2150_v31, %v2062_v55  ;;  %v2159_v27 = vadd.f32 %v2151_v19, %v2063_v41 }
 0x36a   : > { %v2184_v4 = vpop.permute.xlu1 %2183 }
 0x36b   : > { %v2166_v17 = vadd.f32 %v2158_v50, %v2110_v14  ;;  %v2167_v52 = vadd.f32 %v2159_v27, %v2111_v42 }
 0x36d   : > { %v2731_v5 = vpack.c.bf16 %v2167_v52, %v2166_v17 }
 0x36e   : > { %v2189_v57 = vpop.permute.xlu1 %2188 }
 0x36f   : > { %2733 = vmatprep.subr.msk.bf16.mxu1 %vm4155_vm0, %v2731_v5 }
 0x370   : > { %2736 = vmatpush3.bf16.xpose.msk.msra.mxu1 %vm4155_vm0, %v2731_v5 }
 0x372   : > { %v2194_v18 = vpop.permute.xlu1 %2193 }
 0x377   : > { %2660 = vmatmul.mubr.msk.f32.vlgmr.msra.gmra.mrb[8].mxu1 %vm2196_vm6, %v2169_v12 }
 0x378   : > { %2662 = vmatprep.mubr.msk.f32.mxu1 %vm2196_vm6, %v2170_v15 }
 0x37b   : > { %2663 = vmatmul.mubr.msk.f32.gmra.mrb[10].mxu1 %vm2196_vm6, %v2171_v33 }
 0x44a   : > { %v2661_v1 = vpop.f32.mrb[8].mxu1 }
 0x44b   : > { %v2305_v56 = vadd.f32 %v2661_v1, %v2184_v4  ;;  %v2299_v10 = vpop.f32.mrb[9].mxu1 }
 0x44c   : > { %v2300_v22 = vadd.f32 %v2299_v10, %v2179_v9 }
 0x44d   : > { %2319 = vst.msk [vmem:[%s421_s27 + $0x8] sm:$0xff] %vm4523_vm14, %v2305_v56 }
 0x44e   : > { %2318 = vst.msk [vmem:[%s421_s27] sm:$0xff] %vm4524_vm3, %v2300_v22  ;;  %v2664_v51 = vpop.f32.mrb[10].mxu1 }
 0x44f   : > { %v2315_v60 = vadd.f32 %v2664_v51, %v2194_v18  ;;  %v2309_v23 = vpop.f32.mrb[11].mxu1 }
 0x450   : > { %v2310_v11 = vadd.f32 %v2309_v23, %v2189_v57 }
 0x451   : > { %2321 = vst.msk [vmem:[%s421_s27 + $0x18] sm:$0xff] %vm4525_vm15, %v2315_v60 }
 0x452   : > { %2320 = vst.msk [vmem:[%s421_s27 + $0x10] sm:$0xff] %vm4526_vm4, %v2310_v11 }
 0x453   : > { %2881 = shalt.err (!%p2878_p3)
}
 0x454   : > { %s2882_s29 = scalar_lea.hbm %s4316_s20, 512  ;;  %s2886_s17 = scalar_lea.hbm %s4373_s12, 1024 }
 0x455   : > { %p2883_p4 = scmp.ne.s32.totalorder %s4316_s20, %s2882_s29  ;;  %p2887_p9 = scmp.lt.u32.totalorder %s4316_s20, %s4373_s12 }
 0x456   : > { %p2888_p10 = scmp.lt.u32.totalorder %s2886_s17, %s2882_s29  ;;  %p2890_p12 = scmp.lt.u32.totalorder %s2882_s29, %s4316_s20 }
 0x457   : > { %p2884_p7 = pnand %p2883_p4, %p3045_p5 }
 0x458   : > { %p2889_p11 = por %p2888_p10, %p2887_p9 }
 0x459   : > { %p2885_p8 = pneg %p2884_p7 }
 0x45a   : > { %p2891_p13 = por %p2890_p12, %p2889_p11 }
 0x45c   : > { %p2892_p0 = pnand %p2891_p13, %p2885_p8 }
 0x45e   : > { %2895 = shalt.err (!%p2892_p0)
}
 0x45f   : > { %s2940_s26 = smov 128   ;;  %s2941_s28 = smov 8  }
 0x460   : > { %2769 = dma.vmem_to_hbm [thread:$0]  (%p3045_p5), %s4311_s16, 512, %s4316_s20, %s4320_s25, %s2940_s26, %s2940_s26, %s2941_s28  }
 0x461 PF: > { %p2775_p1 = scmp.ge.s32.totalorder %s2930_s24, 2  ;;  %s2351_s23 = sand.u32 1, %s2918_s21  }
 0x462   : > { %s2352_s30 = scalar_lea.sflag [#allocation4], %s2351_s23 }
 0x463   : > { %p2772_p2 = pnand %p2775_p1, %p3049_p6 }
 0x465   : > { %2913 = dma.done.wait (!%p2772_p2), %s2352_s30, 512  }
 0x466   : > { %2915 = vsyncadd (!%p2772_p2), %s2352_s30, 4294966784  ;;  %s4527_s24 = sld [smem:[#allocation7_spill]]  ;;  %s4528_s29 = sld [smem:[#allocation6_spill]] }
 0x467   : > { %s4529_s23 = sld [smem:[#allocation8_spill]]  ;;  %s4530_s21 = smov %s2922_s22 }
 0x46c   : > { %p22_p3 = scmp.ge.s32.totalorder %s4527_s24, 4   ;;  %s4531_s22 = smov %s4528_s29 }
 0x46e   :  { %24 = sbr.rel (!%p22_p3) target bundleno = 3 (0x3), region = 106 }
 0x475   :  { %2357 = vsyncpa [#allocation4], 1 }
 0x476   :  { %2359 = vsyncpa [#allocation4 + $0x1], 1 }

</bundles_post_ra>
